<compile_context>
chip_gen: v7x
topology: tpu7x:2x2x1
jax: 0.10.0
libtpu: 0.0.40
codegen_flags: <defaults>
</compile_context>

<pallas_src>
import functools

import jax
import jax.numpy as jnp
from jax import lax
from jax.experimental import pallas as pl
from jax.experimental.pallas import tpu as pltpu


def _round_up(n, m):
    return ((n + m - 1) // m) * m


# ----------------------------------------------------------------------------
# Pallas kernel: whole TCN forward for ONE batch element (one grid step).
# ----------------------------------------------------------------------------
def _tcn_fused_kernel(*refs, layer_meta, K, Lp):
    """refs = (x_ref, <per-layer param refs>, o_ref).

    Activations are (Lp, Cp) f32 values; channels on the 128-lane axis
    (padded per layer), time on the sublane axis (padded to a multiple of 8).
    Each causal dilated conv = K per-tap bf16 MXU matmuls accumulated in f32
    with an output-side time shift (roll + mask) — no im2col, no pad/concat.
    """
    x_ref = refs[0]
    o_ref = refs[-1]
    prefs = refs[1:-1]

    h = x_ref[0].astype(jnp.float32)                       # (Lp, Cin_p0)

    def causal_conv(h_f32, w_ref, b_ref, dilation):
        # w_ref: (K, Cin_p, Cout_p) bf16;  b_ref: (1, Cout_p) f32
        cout_p = w_ref.shape[2]
        h_bf = h_f32.astype(jnp.bfloat16)                  # bf16 MXU operand
        # Tap K-1 has zero time shift; fold the bias add into its result.
        acc = jnp.dot(h_bf, w_ref[K - 1],
                      preferred_element_type=jnp.float32) + b_ref[...]
        row = lax.broadcasted_iota(jnp.int32, (Lp, cout_p), 0)   # hoisted
        for k in range(K - 1):
            s = (K - 1 - k) * dilation                     # causal time shift
            if s >= Lp:
                continue            # tap reaches before t=0 for every row
            z = jnp.dot(h_bf, w_ref[k], preferred_element_type=jnp.float32)
            # output-side shift: y[t] += z[t-s]  (roll = XLU slot, mask = VPU)
            z = pltpu.roll(z, shift=s, axis=0)
            acc = acc + jnp.where(row >= s, z, 0.0)
        return acc

    i = 0
    for dilation, has_downsample in layer_meta:
        w1, b1, w2, b2 = prefs[i], prefs[i + 1], prefs[i + 2], prefs[i + 3]
        i += 4
        # conv1 -> chomp -> ReLU -> (dropout=identity) -> conv2 -> chomp -> ReLU
        h1 = jnp.maximum(causal_conv(h, w1, b1, dilation), 0.0)
        out = jnp.maximum(causal_conv(h1, w2, b2, dilation), 0.0)
        # residual branch
        if has_downsample:
            wd, bd = prefs[i], prefs[i + 1]
            i += 2
            res = jnp.dot(h.astype(jnp.bfloat16), wd[...],
                          preferred_element_type=jnp.float32) + bd[...]
        else:
            res = h
        h = jnp.maximum(out + res, 0.0)

    o_ref[0] = h.astype(o_ref.dtype)


# ----------------------------------------------------------------------------
# Wrapper: PyTorch-compatible (B, C, L) interface.
# ----------------------------------------------------------------------------
def temporal_conv_net(x_ncl, params, kernel_size):
    """x_ncl: (B, C_in, L)  ->  (B, C_out, L)  (same axis convention as PyTorch)."""
    B, Cin, L = x_ncl.shape
    K = kernel_size
    Lp = _round_up(max(L, 8), 8)            # sublane-aligned matmul M dimension

    # per-layer lane-padded channel widths
    cps = []
    prev_c = Cin
    for p in params:
        out_c = p["w1"].shape[0]
        cps.append((_round_up(prev_c, 128), _round_up(out_c, 128)))
        prev_c = out_c
    cin_p0 = cps[0][0]
    cout_p_last = cps[-1][1]

    x_blc = jnp.transpose(x_ncl, (0, 2, 1))                       # (B, L, Cin)
    x_pad = jnp.pad(x_blc, ((0, 0), (0, Lp - L), (0, cin_p0 - Cin)))

    def conv_weight_taps(w, cinp, coutp):    # (Cout, Cin, K) -> (K, cinp, coutp) bf16
        cout, cin, k = w.shape
        wt = jnp.transpose(w, (2, 1, 0))                          # (K, Cin, Cout)
        wt = jnp.pad(wt, ((0, 0), (0, cinp - cin), (0, coutp - cout)))
        return wt.astype(jnp.bfloat16)

    def pad_bias(b, coutp):                  # (Cout,) -> (1, coutp) f32
        return jnp.pad(b, (0, coutp - b.shape[0])).astype(jnp.float32)[None, :]

    def resident_spec(a):                    # weights: constant index_map -> VMEM-resident
        zero_idx = (0,) * a.ndim
        return pl.BlockSpec(a.shape, lambda b: zero_idx)

    kernel_inputs = [x_pad]
    in_specs = [pl.BlockSpec((1, Lp, cin_p0), lambda b: (b, 0, 0))]
    layer_meta = []
    for (cinp, coutp), p in zip(cps, params):
        has_down = p["wd"] is not None
        layer_meta.append((int(p["dilation"]), has_down))
        arrs = [conv_weight_taps(p["w1"], cinp, coutp), pad_bias(p["b1"], coutp),
                conv_weight_taps(p["w2"], coutp, coutp), pad_bias(p["b2"], coutp)]
        if has_down:                         # only DMA real downsample weights
            wd = p["wd"][:, :, 0]                                 # (Cout, Cin)
            wdp = jnp.pad(jnp.transpose(wd, (1, 0)),
                          ((0, cinp - wd.shape[1]), (0, coutp - wd.shape[0])))
            arrs += [wdp.astype(jnp.bfloat16), pad_bias(p["bd"], coutp)]
        kernel_inputs += arrs
        in_specs += [resident_spec(a) for a in arrs]

    kernel = functools.partial(_tcn_fused_kernel, layer_meta=tuple(layer_meta),
                               K=K, Lp=Lp)

    # VMEM budget from the actual shapes (resident weights + double-buffered
    # input/output blocks + live per-layer temporaries), capped for the chip.
    weight_bytes = sum(int(a.size) * a.dtype.itemsize for a in kernel_inputs[1:])
    x_blk_bytes = Lp * cin_p0 * x_pad.dtype.itemsize
    o_blk_bytes = Lp * cout_p_last * x_ncl.dtype.itemsize
    cp_max = max(max(ci, co) for ci, co in cps)
    temp_bytes = 10 * Lp * cp_max * 4
    try:
        phys_vmem = int(pltpu.get_tpu_info().vmem_capacity_bytes)
    except Exception:
        phys_vmem = 64 * 1024 * 1024
    vmem_bytes = weight_bytes + 2 * (x_blk_bytes + o_blk_bytes) + temp_bytes + (4 << 20)
    vmem_bytes = int(min(max(vmem_bytes, 16 << 20), int(phys_vmem * 0.7)))

    out_padded = pl.pallas_call(
        kernel,
        out_shape=jax.ShapeDtypeStruct((B, Lp, cout_p_last), x_ncl.dtype),
        grid=(B,),
        in_specs=in_specs,
        out_specs=pl.BlockSpec((1, Lp, cout_p_last), lambda b: (b, 0, 0)),
        compiler_params=pltpu.CompilerParams(
            dimension_semantics=("parallel",),      # megacore on v7x
            vmem_limit_bytes=vmem_bytes),
    )(*kernel_inputs)

    Cout = params[-1]["w1"].shape[0]
    return jnp.transpose(out_padded[:, :L, :Cout], (0, 2, 1))      # (B, Cout, L)


# ----------------------------------------------------------------------------
# Parameter construction (deterministic, replicating module __init__ shapes).
# ----------------------------------------------------------------------------
def _weight_norm(v, g):
    # PyTorch weight_norm over dims != 0 (per output channel): w = g * v / ||v||
    norm = jnp.sqrt(jnp.sum(v * v, axis=(1, 2), keepdims=True))
    return g * v / norm


def init_tcn_params(key, input_size, channel_sizes, kernel_size):
    params = []
    for i, out_ch in enumerate(channel_sizes):
        in_ch = input_size if i == 0 else channel_sizes[i - 1]
        dilation = 2 ** i
        key, *ks = jax.random.split(key, 9)
        v1 = jax.random.normal(ks[0], (out_ch, in_ch, kernel_size), jnp.float32) * 0.05
        g1 = jax.random.uniform(ks[1], (out_ch, 1, 1), jnp.float32, 0.5, 1.5)
        b1 = jax.random.normal(ks[2], (out_ch,), jnp.float32) * 0.05
        w1 = _weight_norm(v1, g1)                       # (Cout, Cin, K) effective
        v2 = jax.random.normal(ks[3], (out_ch, out_ch, kernel_size), jnp.float32) * 0.05
        g2 = jax.random.uniform(ks[4], (out_ch, 1, 1), jnp.float32, 0.5, 1.5)
        b2 = jax.random.normal(ks[5], (out_ch,), jnp.float32) * 0.05
        w2 = _weight_norm(v2, g2)
        if in_ch != out_ch:
            wd = jax.random.normal(ks[6], (out_ch, in_ch, 1), jnp.float32) * 0.01
            bd = jax.random.normal(ks[7], (out_ch,), jnp.float32) * 0.05
        else:
            wd, bd = None, None
        params.append(dict(w1=w1, b1=b1, w2=w2, b2=b2, wd=wd, bd=bd,
                           dilation=dilation))
    return params


# ----------------------------------------------------------------------------
# Pure-JAX reference (lax.conv_general_dilated) for the correctness check.
# ----------------------------------------------------------------------------
def _ref_tcn(x_ncl, params, kernel_size):
    def conv(x, w, b, d):
        pad = (kernel_size - 1) * d if w.shape[-1] > 1 else 0
        y = lax.conv_general_dilated(x, w, window_strides=(1,),
                                     padding=[(pad, pad)], rhs_dilation=(d,),
                                     dimension_numbers=("NCH", "OIH", "NCH"))
        y = y + b[None, :, None]
        return y[:, :, :x.shape[2]]             # Chomp1d

    h = x_ncl
    for p in params:
        o = jax.nn.relu(conv(h, p["w1"], p["b1"], p["dilation"]))
        o = jax.nn.relu(conv(o, p["w2"], p["b2"], p["dilation"]))
        res = h if p["wd"] is None else conv(h, p["wd"], p["bd"], 1)
        h = jax.nn.relu(o + res)
    return h


if __name__ == "__main__":
    # hyperparameters implied by the module
    B, L = 2, 16
    input_size = 4
    channel_sizes = [8, 8]
    kernel_size = 3

    key = jax.random.PRNGKey(0)
    key, kx = jax.random.split(key)
    x = jax.random.normal(kx, (B, input_size, L), jnp.float32)   # NCL, like PyTorch

    params = init_tcn_params(key, input_size, channel_sizes, kernel_size)

    out = temporal_conv_net(x, params, kernel_size)
    out = jax.block_until_ready(out)

    ref = jax.block_until_ready(_ref_tcn(x, params, kernel_size))
    assert out.shape == (B, channel_sizes[-1], L), out.shape
    # bf16 MXU operands vs. a pure-f32 reference -> loosened tolerance.
    assert jnp.allclose(out, ref, atol=5e-2, rtol=5e-2), \
        float(jnp.max(jnp.abs(out - ref)))

    print("KERNEL_OK")
</pallas_src>

<mosaic_0001>
module attributes {stable_mosaic.version = 11 : i64} {
  func.func @_tcn_fused_kernel(%arg0: i32, %arg1: memref<1x16x128xf32, #tpu.memory_space<vmem>>, %arg2: memref<3x128x128xbf16, #tpu.memory_space<vmem>>, %arg3: memref<1x128xf32, #tpu.memory_space<vmem>>, %arg4: memref<3x128x128xbf16, #tpu.memory_space<vmem>>, %arg5: memref<1x128xf32, #tpu.memory_space<vmem>>, %arg6: memref<128x128xbf16, #tpu.memory_space<vmem>>, %arg7: memref<1x128xf32, #tpu.memory_space<vmem>>, %arg8: memref<3x128x128xbf16, #tpu.memory_space<vmem>>, %arg9: memref<1x128xf32, #tpu.memory_space<vmem>>, %arg10: memref<3x128x128xbf16, #tpu.memory_space<vmem>>, %arg11: memref<1x128xf32, #tpu.memory_space<vmem>>, %arg12: memref<1x16x128xf32, #tpu.memory_space<vmem>>) attributes {dimension_semantics = [#tpu.dimension_semantics<parallel>], iteration_bounds = array<i64: 2>, scalar_prefetch = 0 : i64, scratch_operands = 0 : i64, tpu.core_type = #tpu.core_type<tc>, window_params = [{transform_indices = @transform_0, window_bounds = array<i64: 1, 16, 128>}, {pipeline_mode = #tpu.pipeline_mode<synchronous>, transform_indices = @transform_1, window_bounds = array<i64: 3, 128, 128>}, {pipeline_mode = #tpu.pipeline_mode<synchronous>, transform_indices = @transform_2, window_bounds = array<i64: 1, 128>}, {pipeline_mode = #tpu.pipeline_mode<synchronous>, transform_indices = @transform_3, window_bounds = array<i64: 3, 128, 128>}, {pipeline_mode = #tpu.pipeline_mode<synchronous>, transform_indices = @transform_4, window_bounds = array<i64: 1, 128>}, {pipeline_mode = #tpu.pipeline_mode<synchronous>, transform_indices = @transform_5, window_bounds = array<i64: 128, 128>}, {pipeline_mode = #tpu.pipeline_mode<synchronous>, transform_indices = @transform_6, window_bounds = array<i64: 1, 128>}, {pipeline_mode = #tpu.pipeline_mode<synchronous>, transform_indices = @transform_7, window_bounds = array<i64: 3, 128, 128>}, {pipeline_mode = #tpu.pipeline_mode<synchronous>, transform_indices = @transform_8, window_bounds = array<i64: 1, 128>}, {pipeline_mode = #tpu.pipeline_mode<synchronous>, transform_indices = @transform_9, window_bounds = array<i64: 3, 128, 128>}, {pipeline_mode = #tpu.pipeline_mode<synchronous>, transform_indices = @transform_10, window_bounds = array<i64: 1, 128>}, {transform_indices = @transform_11, window_bounds = array<i64: 1, 16, 128>}]} {
    %c0 = arith.constant 0 : index
    %c0_0 = arith.constant 0 : index
    %c0_1 = arith.constant 0 : index
    %0 = vector.load %arg1[%c0, %c0_0, %c0_1] : memref<1x16x128xf32, #tpu.memory_space<vmem>>, vector<1x16x128xf32>
    %1 = vector.shape_cast %0 : vector<1x16x128xf32> to vector<16x128xf32>
    %2 = arith.truncf %1 : vector<16x128xf32> to vector<16x128xbf16>
    %c2 = arith.constant 2 : index
    %c0_2 = arith.constant 0 : index
    %c0_3 = arith.constant 0 : index
    %3 = vector.load %arg2[%c2, %c0_2, %c0_3] : memref<3x128x128xbf16, #tpu.memory_space<vmem>>, vector<1x128x128xbf16>
    %4 = vector.shape_cast %3 : vector<1x128x128xbf16> to vector<128x128xbf16>
    %cst = arith.constant dense<0.000000e+00> : vector<16x128xf32>
    %5 = tpu.matmul %2, %4, %cst {dimension_numbers = #tpu.dot_dimension_numbers<[1], [0], [0], [1], [0, 0, 1, 1], [], []>} : vector<16x128xbf16>, vector<128x128xbf16>, vector<16x128xf32> -> vector<16x128xf32>
    %c0_4 = arith.constant 0 : index
    %c0_5 = arith.constant 0 : index
    %6 = vector.load %arg3[%c0_4, %c0_5] : memref<1x128xf32, #tpu.memory_space<vmem>>, vector<1x128xf32>
    %7 = vector.broadcast %6 : vector<1x128xf32> to vector<16x128xf32>
    %8 = arith.addf %5, %7 : vector<16x128xf32>
    %9 = tpu.iota {dimensions = array<i32: 0>} : vector<16x128xi32>
    %c0_6 = arith.constant 0 : index
    %c0_7 = arith.constant 0 : index
    %c0_8 = arith.constant 0 : index
    %10 = vector.load %arg2[%c0_6, %c0_7, %c0_8] : memref<3x128x128xbf16, #tpu.memory_space<vmem>>, vector<1x128x128xbf16>
    %11 = vector.shape_cast %10 : vector<1x128x128xbf16> to vector<128x128xbf16>
    %cst_9 = arith.constant dense<0.000000e+00> : vector<16x128xf32>
    %12 = tpu.matmul %2, %11, %cst_9 {dimension_numbers = #tpu.dot_dimension_numbers<[1], [0], [0], [1], [0, 0, 1, 1], [], []>} : vector<16x128xbf16>, vector<128x128xbf16>, vector<16x128xf32> -> vector<16x128xf32>
    %c2_i32 = arith.constant 2 : i32
    %13 = tpu.dynamic_rotate %12 by %c2_i32 dim 0 : vector<16x128xf32>, i32 -> vector<16x128xf32>
    %c2_i32_10 = arith.constant 2 : i32
    %14 = vector.broadcast %c2_i32_10 : i32 to vector<16x128xi32>
    %15 = arith.cmpi sge, %9, %14 : vector<16x128xi32>
    %cst_11 = arith.constant 0.000000e+00 : f32
    %16 = vector.broadcast %cst_11 : f32 to vector<16x128xf32>
    %17 = arith.select %15, %13, %16 : vector<16x128xi1>, vector<16x128xf32>
    %18 = arith.addf %8, %17 : vector<16x128xf32>
    %c1 = arith.constant 1 : index
    %c0_12 = arith.constant 0 : index
    %c0_13 = arith.constant 0 : index
    %19 = vector.load %arg2[%c1, %c0_12, %c0_13] : memref<3x128x128xbf16, #tpu.memory_space<vmem>>, vector<1x128x128xbf16>
    %20 = vector.shape_cast %19 : vector<1x128x128xbf16> to vector<128x128xbf16>
    %cst_14 = arith.constant dense<0.000000e+00> : vector<16x128xf32>
    %21 = tpu.matmul %2, %20, %cst_14 {dimension_numbers = #tpu.dot_dimension_numbers<[1], [0], [0], [1], [0, 0, 1, 1], [], []>} : vector<16x128xbf16>, vector<128x128xbf16>, vector<16x128xf32> -> vector<16x128xf32>
    %c1_i32 = arith.constant 1 : i32
    %22 = tpu.dynamic_rotate %21 by %c1_i32 dim 0 : vector<16x128xf32>, i32 -> vector<16x128xf32>
    %c1_i32_15 = arith.constant 1 : i32
    %23 = vector.broadcast %c1_i32_15 : i32 to vector<16x128xi32>
    %24 = arith.cmpi sge, %9, %23 : vector<16x128xi32>
    %cst_16 = arith.constant 0.000000e+00 : f32
    %25 = vector.broadcast %cst_16 : f32 to vector<16x128xf32>
    %26 = arith.select %24, %22, %25 : vector<16x128xi1>, vector<16x128xf32>
    %27 = arith.addf %18, %26 : vector<16x128xf32>
    %cst_17 = arith.constant 0.000000e+00 : f32
    %28 = vector.broadcast %cst_17 : f32 to vector<16x128xf32>
    %29 = arith.maximumf %27, %28 : vector<16x128xf32>
    %30 = arith.truncf %29 : vector<16x128xf32> to vector<16x128xbf16>
    %c2_18 = arith.constant 2 : index
    %c0_19 = arith.constant 0 : index
    %c0_20 = arith.constant 0 : index
    %31 = vector.load %arg4[%c2_18, %c0_19, %c0_20] : memref<3x128x128xbf16, #tpu.memory_space<vmem>>, vector<1x128x128xbf16>
    %32 = vector.shape_cast %31 : vector<1x128x128xbf16> to vector<128x128xbf16>
    %cst_21 = arith.constant dense<0.000000e+00> : vector<16x128xf32>
    %33 = tpu.matmul %30, %32, %cst_21 {dimension_numbers = #tpu.dot_dimension_numbers<[1], [0], [0], [1], [0, 0, 1, 1], [], []>} : vector<16x128xbf16>, vector<128x128xbf16>, vector<16x128xf32> -> vector<16x128xf32>
    %c0_22 = arith.constant 0 : index
    %c0_23 = arith.constant 0 : index
    %34 = vector.load %arg5[%c0_22, %c0_23] : memref<1x128xf32, #tpu.memory_space<vmem>>, vector<1x128xf32>
    %35 = vector.broadcast %34 : vector<1x128xf32> to vector<16x128xf32>
    %36 = arith.addf %33, %35 : vector<16x128xf32>
    %37 = tpu.iota {dimensions = array<i32: 0>} : vector<16x128xi32>
    %c0_24 = arith.constant 0 : index
    %c0_25 = arith.constant 0 : index
    %c0_26 = arith.constant 0 : index
    %38 = vector.load %arg4[%c0_24, %c0_25, %c0_26] : memref<3x128x128xbf16, #tpu.memory_space<vmem>>, vector<1x128x128xbf16>
    %39 = vector.shape_cast %38 : vector<1x128x128xbf16> to vector<128x128xbf16>
    %cst_27 = arith.constant dense<0.000000e+00> : vector<16x128xf32>
    %40 = tpu.matmul %30, %39, %cst_27 {dimension_numbers = #tpu.dot_dimension_numbers<[1], [0], [0], [1], [0, 0, 1, 1], [], []>} : vector<16x128xbf16>, vector<128x128xbf16>, vector<16x128xf32> -> vector<16x128xf32>
    %c2_i32_28 = arith.constant 2 : i32
    %41 = tpu.dynamic_rotate %40 by %c2_i32_28 dim 0 : vector<16x128xf32>, i32 -> vector<16x128xf32>
    %c2_i32_29 = arith.constant 2 : i32
    %42 = vector.broadcast %c2_i32_29 : i32 to vector<16x128xi32>
    %43 = arith.cmpi sge, %37, %42 : vector<16x128xi32>
    %cst_30 = arith.constant 0.000000e+00 : f32
    %44 = vector.broadcast %cst_30 : f32 to vector<16x128xf32>
    %45 = arith.select %43, %41, %44 : vector<16x128xi1>, vector<16x128xf32>
    %46 = arith.addf %36, %45 : vector<16x128xf32>
    %c1_31 = arith.constant 1 : index
    %c0_32 = arith.constant 0 : index
    %c0_33 = arith.constant 0 : index
    %47 = vector.load %arg4[%c1_31, %c0_32, %c0_33] : memref<3x128x128xbf16, #tpu.memory_space<vmem>>, vector<1x128x128xbf16>
    %48 = vector.shape_cast %47 : vector<1x128x128xbf16> to vector<128x128xbf16>
    %cst_34 = arith.constant dense<0.000000e+00> : vector<16x128xf32>
    %49 = tpu.matmul %30, %48, %cst_34 {dimension_numbers = #tpu.dot_dimension_numbers<[1], [0], [0], [1], [0, 0, 1, 1], [], []>} : vector<16x128xbf16>, vector<128x128xbf16>, vector<16x128xf32> -> vector<16x128xf32>
    %c1_i32_35 = arith.constant 1 : i32
    %50 = tpu.dynamic_rotate %49 by %c1_i32_35 dim 0 : vector<16x128xf32>, i32 -> vector<16x128xf32>
    %c1_i32_36 = arith.constant 1 : i32
    %51 = vector.broadcast %c1_i32_36 : i32 to vector<16x128xi32>
    %52 = arith.cmpi sge, %37, %51 : vector<16x128xi32>
    %cst_37 = arith.constant 0.000000e+00 : f32
    %53 = vector.broadcast %cst_37 : f32 to vector<16x128xf32>
    %54 = arith.select %52, %50, %53 : vector<16x128xi1>, vector<16x128xf32>
    %55 = arith.addf %46, %54 : vector<16x128xf32>
    %cst_38 = arith.constant 0.000000e+00 : f32
    %56 = vector.broadcast %cst_38 : f32 to vector<16x128xf32>
    %57 = arith.maximumf %55, %56 : vector<16x128xf32>
    %58 = arith.truncf %1 : vector<16x128xf32> to vector<16x128xbf16>
    %c0_39 = arith.constant 0 : index
    %c0_40 = arith.constant 0 : index
    %59 = vector.load %arg6[%c0_39, %c0_40] : memref<128x128xbf16, #tpu.memory_space<vmem>>, vector<128x128xbf16>
    %cst_41 = arith.constant dense<0.000000e+00> : vector<16x128xf32>
    %60 = tpu.matmul %58, %59, %cst_41 {dimension_numbers = #tpu.dot_dimension_numbers<[1], [0], [0], [1], [0, 0, 1, 1], [], []>} : vector<16x128xbf16>, vector<128x128xbf16>, vector<16x128xf32> -> vector<16x128xf32>
    %c0_42 = arith.constant 0 : index
    %c0_43 = arith.constant 0 : index
    %61 = vector.load %arg7[%c0_42, %c0_43] : memref<1x128xf32, #tpu.memory_space<vmem>>, vector<1x128xf32>
    %62 = vector.broadcast %61 : vector<1x128xf32> to vector<16x128xf32>
    %63 = arith.addf %60, %62 : vector<16x128xf32>
    %64 = arith.addf %57, %63 : vector<16x128xf32>
    %cst_44 = arith.constant 0.000000e+00 : f32
    %65 = vector.broadcast %cst_44 : f32 to vector<16x128xf32>
    %66 = arith.maximumf %64, %65 : vector<16x128xf32>
    %67 = arith.truncf %66 : vector<16x128xf32> to vector<16x128xbf16>
    %c2_45 = arith.constant 2 : index
    %c0_46 = arith.constant 0 : index
    %c0_47 = arith.constant 0 : index
    %68 = vector.load %arg8[%c2_45, %c0_46, %c0_47] : memref<3x128x128xbf16, #tpu.memory_space<vmem>>, vector<1x128x128xbf16>
    %69 = vector.shape_cast %68 : vector<1x128x128xbf16> to vector<128x128xbf16>
    %cst_48 = arith.constant dense<0.000000e+00> : vector<16x128xf32>
    %70 = tpu.matmul %67, %69, %cst_48 {dimension_numbers = #tpu.dot_dimension_numbers<[1], [0], [0], [1], [0, 0, 1, 1], [], []>} : vector<16x128xbf16>, vector<128x128xbf16>, vector<16x128xf32> -> vector<16x128xf32>
    %c0_49 = arith.constant 0 : index
    %c0_50 = arith.constant 0 : index
    %71 = vector.load %arg9[%c0_49, %c0_50] : memref<1x128xf32, #tpu.memory_space<vmem>>, vector<1x128xf32>
    %72 = vector.broadcast %71 : vector<1x128xf32> to vector<16x128xf32>
    %73 = arith.addf %70, %72 : vector<16x128xf32>
    %74 = tpu.iota {dimensions = array<i32: 0>} : vector<16x128xi32>
    %c0_51 = arith.constant 0 : index
    %c0_52 = arith.constant 0 : index
    %c0_53 = arith.constant 0 : index
    %75 = vector.load %arg8[%c0_51, %c0_52, %c0_53] : memref<3x128x128xbf16, #tpu.memory_space<vmem>>, vector<1x128x128xbf16>
    %76 = vector.shape_cast %75 : vector<1x128x128xbf16> to vector<128x128xbf16>
    %cst_54 = arith.constant dense<0.000000e+00> : vector<16x128xf32>
    %77 = tpu.matmul %67, %76, %cst_54 {dimension_numbers = #tpu.dot_dimension_numbers<[1], [0], [0], [1], [0, 0, 1, 1], [], []>} : vector<16x128xbf16>, vector<128x128xbf16>, vector<16x128xf32> -> vector<16x128xf32>
    %c4_i32 = arith.constant 4 : i32
    %78 = tpu.dynamic_rotate %77 by %c4_i32 dim 0 : vector<16x128xf32>, i32 -> vector<16x128xf32>
    %c4_i32_55 = arith.constant 4 : i32
    %79 = vector.broadcast %c4_i32_55 : i32 to vector<16x128xi32>
    %80 = arith.cmpi sge, %74, %79 : vector<16x128xi32>
    %cst_56 = arith.constant 0.000000e+00 : f32
    %81 = vector.broadcast %cst_56 : f32 to vector<16x128xf32>
    %82 = arith.select %80, %78, %81 : vector<16x128xi1>, vector<16x128xf32>
    %83 = arith.addf %73, %82 : vector<16x128xf32>
    %c1_57 = arith.constant 1 : index
    %c0_58 = arith.constant 0 : index
    %c0_59 = arith.constant 0 : index
    %84 = vector.load %arg8[%c1_57, %c0_58, %c0_59] : memref<3x128x128xbf16, #tpu.memory_space<vmem>>, vector<1x128x128xbf16>
    %85 = vector.shape_cast %84 : vector<1x128x128xbf16> to vector<128x128xbf16>
    %cst_60 = arith.constant dense<0.000000e+00> : vector<16x128xf32>
    %86 = tpu.matmul %67, %85, %cst_60 {dimension_numbers = #tpu.dot_dimension_numbers<[1], [0], [0], [1], [0, 0, 1, 1], [], []>} : vector<16x128xbf16>, vector<128x128xbf16>, vector<16x128xf32> -> vector<16x128xf32>
    %c2_i32_61 = arith.constant 2 : i32
    %87 = tpu.dynamic_rotate %86 by %c2_i32_61 dim 0 : vector<16x128xf32>, i32 -> vector<16x128xf32>
    %c2_i32_62 = arith.constant 2 : i32
    %88 = vector.broadcast %c2_i32_62 : i32 to vector<16x128xi32>
    %89 = arith.cmpi sge, %74, %88 : vector<16x128xi32>
    %cst_63 = arith.constant 0.000000e+00 : f32
    %90 = vector.broadcast %cst_63 : f32 to vector<16x128xf32>
    %91 = arith.select %89, %87, %90 : vector<16x128xi1>, vector<16x128xf32>
    %92 = arith.addf %83, %91 : vector<16x128xf32>
    %cst_64 = arith.constant 0.000000e+00 : f32
    %93 = vector.broadcast %cst_64 : f32 to vector<16x128xf32>
    %94 = arith.maximumf %92, %93 : vector<16x128xf32>
    %95 = arith.truncf %94 : vector<16x128xf32> to vector<16x128xbf16>
    %c2_65 = arith.constant 2 : index
    %c0_66 = arith.constant 0 : index
    %c0_67 = arith.constant 0 : index
    %96 = vector.load %arg10[%c2_65, %c0_66, %c0_67] : memref<3x128x128xbf16, #tpu.memory_space<vmem>>, vector<1x128x128xbf16>
    %97 = vector.shape_cast %96 : vector<1x128x128xbf16> to vector<128x128xbf16>
    %cst_68 = arith.constant dense<0.000000e+00> : vector<16x128xf32>
    %98 = tpu.matmul %95, %97, %cst_68 {dimension_numbers = #tpu.dot_dimension_numbers<[1], [0], [0], [1], [0, 0, 1, 1], [], []>} : vector<16x128xbf16>, vector<128x128xbf16>, vector<16x128xf32> -> vector<16x128xf32>
    %c0_69 = arith.constant 0 : index
    %c0_70 = arith.constant 0 : index
    %99 = vector.load %arg11[%c0_69, %c0_70] : memref<1x128xf32, #tpu.memory_space<vmem>>, vector<1x128xf32>
    %100 = vector.broadcast %99 : vector<1x128xf32> to vector<16x128xf32>
    %101 = arith.addf %98, %100 : vector<16x128xf32>
    %102 = tpu.iota {dimensions = array<i32: 0>} : vector<16x128xi32>
    %c0_71 = arith.constant 0 : index
    %c0_72 = arith.constant 0 : index
    %c0_73 = arith.constant 0 : index
    %103 = vector.load %arg10[%c0_71, %c0_72, %c0_73] : memref<3x128x128xbf16, #tpu.memory_space<vmem>>, vector<1x128x128xbf16>
    %104 = vector.shape_cast %103 : vector<1x128x128xbf16> to vector<128x128xbf16>
    %cst_74 = arith.constant dense<0.000000e+00> : vector<16x128xf32>
    %105 = tpu.matmul %95, %104, %cst_74 {dimension_numbers = #tpu.dot_dimension_numbers<[1], [0], [0], [1], [0, 0, 1, 1], [], []>} : vector<16x128xbf16>, vector<128x128xbf16>, vector<16x128xf32> -> vector<16x128xf32>
    %c4_i32_75 = arith.constant 4 : i32
    %106 = tpu.dynamic_rotate %105 by %c4_i32_75 dim 0 : vector<16x128xf32>, i32 -> vector<16x128xf32>
    %c4_i32_76 = arith.constant 4 : i32
    %107 = vector.broadcast %c4_i32_76 : i32 to vector<16x128xi32>
    %108 = arith.cmpi sge, %102, %107 : vector<16x128xi32>
    %cst_77 = arith.constant 0.000000e+00 : f32
    %109 = vector.broadcast %cst_77 : f32 to vector<16x128xf32>
    %110 = arith.select %108, %106, %109 : vector<16x128xi1>, vector<16x128xf32>
    %111 = arith.addf %101, %110 : vector<16x128xf32>
    %c1_78 = arith.constant 1 : index
    %c0_79 = arith.constant 0 : index
    %c0_80 = arith.constant 0 : index
    %112 = vector.load %arg10[%c1_78, %c0_79, %c0_80] : memref<3x128x128xbf16, #tpu.memory_space<vmem>>, vector<1x128x128xbf16>
    %113 = vector.shape_cast %112 : vector<1x128x128xbf16> to vector<128x128xbf16>
    %cst_81 = arith.constant dense<0.000000e+00> : vector<16x128xf32>
    %114 = tpu.matmul %95, %113, %cst_81 {dimension_numbers = #tpu.dot_dimension_numbers<[1], [0], [0], [1], [0, 0, 1, 1], [], []>} : vector<16x128xbf16>, vector<128x128xbf16>, vector<16x128xf32> -> vector<16x128xf32>
    %c2_i32_82 = arith.constant 2 : i32
    %115 = tpu.dynamic_rotate %114 by %c2_i32_82 dim 0 : vector<16x128xf32>, i32 -> vector<16x128xf32>
    %c2_i32_83 = arith.constant 2 : i32
    %116 = vector.broadcast %c2_i32_83 : i32 to vector<16x128xi32>
    %117 = arith.cmpi sge, %102, %116 : vector<16x128xi32>
    %cst_84 = arith.constant 0.000000e+00 : f32
    %118 = vector.broadcast %cst_84 : f32 to vector<16x128xf32>
    %119 = arith.select %117, %115, %118 : vector<16x128xi1>, vector<16x128xf32>
    %120 = arith.addf %111, %119 : vector<16x128xf32>
    %cst_85 = arith.constant 0.000000e+00 : f32
    %121 = vector.broadcast %cst_85 : f32 to vector<16x128xf32>
    %122 = arith.maximumf %120, %121 : vector<16x128xf32>
    %123 = arith.addf %122, %66 : vector<16x128xf32>
    %cst_86 = arith.constant 0.000000e+00 : f32
    %124 = vector.broadcast %cst_86 : f32 to vector<16x128xf32>
    %125 = arith.maximumf %123, %124 : vector<16x128xf32>
    %c0_87 = arith.constant 0 : index
    %c0_88 = arith.constant 0 : index
    %c0_89 = arith.constant 0 : index
    %126 = vector.load %arg12[%c0_87, %c0_88, %c0_89] : memref<1x16x128xf32, #tpu.memory_space<vmem>>, vector<1x16x128xf32>
    %127 = vector.shape_cast %126 : vector<1x16x128xf32> to vector<16x128xf32>
    %128 = vector.shape_cast %125 : vector<16x128xf32> to vector<1x16x128xf32>
    tpu.vector_store %arg12[%c0_87, %c0_88, %c0_89], %128 {strides = array<i32>} : memref<1x16x128xf32, #tpu.memory_space<vmem>>, vector<1x16x128xf32>,
    return
  }
  func.func @transform_0(%arg0: i32) -> (i32, i32, i32) {
    %c0_i32 = arith.constant 0 : i32
    %c0_i32_0 = arith.constant 0 : i32
    %c0_i32_1 = arith.constant 0 : i32
    return %arg0, %c0_i32, %c0_i32_0 : i32, i32, i32
  }
  func.func @transform_1(%arg0: i32) -> (i32, i32, i32) {
    %c0_i32 = arith.constant 0 : i32
    %c0_i32_0 = arith.constant 0 : i32
    %c0_i32_1 = arith.constant 0 : i32
    %c0_i32_2 = arith.constant 0 : i32
    return %c0_i32, %c0_i32_0, %c0_i32_1 : i32, i32, i32
  }
  func.func @transform_2(%arg0: i32) -> (i32, i32) {
    %c0_i32 = arith.constant 0 : i32
    %c0_i32_0 = arith.constant 0 : i32
    %c0_i32_1 = arith.constant 0 : i32
    return %c0_i32, %c0_i32_0 : i32, i32
  }
  func.func @transform_3(%arg0: i32) -> (i32, i32, i32) {
    %c0_i32 = arith.constant 0 : i32
    %c0_i32_0 = arith.constant 0 : i32
    %c0_i32_1 = arith.constant 0 : i32
    %c0_i32_2 = arith.constant 0 : i32
    return %c0_i32, %c0_i32_0, %c0_i32_1 : i32, i32, i32
  }
  func.func @transform_4(%arg0: i32) -> (i32, i32) {
    %c0_i32 = arith.constant 0 : i32
    %c0_i32_0 = arith.constant 0 : i32
    %c0_i32_1 = arith.constant 0 : i32
    return %c0_i32, %c0_i32_0 : i32, i32
  }
  func.func @transform_5(%arg0: i32) -> (i32, i32) {
    %c0_i32 = arith.constant 0 : i32
    %c0_i32_0 = arith.constant 0 : i32
    %c0_i32_1 = arith.constant 0 : i32
    return %c0_i32, %c0_i32_0 : i32, i32
  }
  func.func @transform_6(%arg0: i32) -> (i32, i32) {
    %c0_i32 = arith.constant 0 : i32
    %c0_i32_0 = arith.constant 0 : i32
    %c0_i32_1 = arith.constant 0 : i32
    return %c0_i32, %c0_i32_0 : i32, i32
  }
  func.func @transform_7(%arg0: i32) -> (i32, i32, i32) {
    %c0_i32 = arith.constant 0 : i32
    %c0_i32_0 = arith.constant 0 : i32
    %c0_i32_1 = arith.constant 0 : i32
    %c0_i32_2 = arith.constant 0 : i32
    return %c0_i32, %c0_i32_0, %c0_i32_1 : i32, i32, i32
  }
  func.func @transform_8(%arg0: i32) -> (i32, i32) {
    %c0_i32 = arith.constant 0 : i32
    %c0_i32_0 = arith.constant 0 : i32
    %c0_i32_1 = arith.constant 0 : i32
    return %c0_i32, %c0_i32_0 : i32, i32
  }
  func.func @transform_9(%arg0: i32) -> (i32, i32, i32) {
    %c0_i32 = arith.constant 0 : i32
    %c0_i32_0 = arith.constant 0 : i32
    %c0_i32_1 = arith.constant 0 : i32
    %c0_i32_2 = arith.constant 0 : i32
    return %c0_i32, %c0_i32_0, %c0_i32_1 : i32, i32, i32
  }
  func.func @transform_10(%arg0: i32) -> (i32, i32) {
    %c0_i32 = arith.constant 0 : i32
    %c0_i32_0 = arith.constant 0 : i32
    %c0_i32_1 = arith.constant 0 : i32
    return %c0_i32, %c0_i32_0 : i32, i32
  }
  func.func @transform_11(%arg0: i32) -> (i32, i32, i32) {
    %c0_i32 = arith.constant 0 : i32
    %c0_i32_0 = arith.constant 0 : i32
    %c0_i32_1 = arith.constant 0 : i32
    return %arg0, %c0_i32, %c0_i32_0 : i32, i32, i32
  }
}

</mosaic_0001>

<bundles_post_ra>
// kernel: tpu_custom_call.1
= control target key start
LH: loop header
LB: loop body
LE: loop exit
PB: predicated region body
PF: predicated region fallthrough
CT: control target
= control target key end

     0   :  { %s3713_s0 = inlined_call_operand.hbm [shape: f32[2,16,128], index: 0, kind: input, shape index: {}]   ;;  %s3714_s1 = inlined_call_operand.hbm [shape: bf16[3,128,128], index: 1, kind: input, shape index: {}]   ;;  %s3715_s2 = inlined_call_operand.vmem [shape: f32[1,128], index: 2, kind: input, shape index: {}]   ;;  %s3716_s3 = inlined_call_operand.hbm [shape: bf16[3,128,128], index: 3, kind: input, shape index: {}]   ;;  %s3717_s4 = inlined_call_operand.vmem [shape: f32[1,128], index: 4, kind: input, shape index: {}]   ;;  %s3718_s5 = inlined_call_operand.hbm [shape: bf16[128,128], index: 5, kind: input, shape index: {}]   ;;  %s3719_s6 = inlined_call_operand.vmem [shape: f32[1,128], index: 6, kind: input, shape index: {}]   ;;  %s3720_s7 = inlined_call_operand.hbm [shape: bf16[3,128,128], index: 7, kind: input, shape index: {}]   ;;  %s3721_s8 = inlined_call_operand.vmem [shape: f32[1,128], index: 8, kind: input, shape index: {}]   ;;  %s3722_s9 = inlined_call_operand.hbm [shape: bf16[3,128,128], index: 9, kind: input, shape index: {}]   ;;  %s3723_s10 = inlined_call_operand.vmem [shape: f32[1,128], index: 10, kind: input, shape index: {}]   ;;  %s3724_s11 = inlined_call_operand.hbm [shape: f32[2,16,128], index: 11, kind: output, shape index: {}]  }
   0x1   :  { %3729 = sst [smem:[#allocation19_spill]] %s3714_s1 }
   0x2   :  { %3730 = sst [smem:[#allocation20_spill]] %s3721_s8 }
   0x3   :  { %3731 = sst [smem:[#allocation21_spill]] %s3723_s10 }
   0x4   :  { %3732 = sst [smem:[#allocation22_spill]] %s3724_s11 }
   0x5   :  { %16 = vsyncpa [#allocation3], 0 }
   0x6   :  { %18 = vsyncpa [#allocation3 + $0x1], 0 }
   0x7   :  { %19 = vsyncpa [#allocation6], 0 }
   0x8   :  { %20 = vsyncpa [#allocation9], 0 }
   0x9   :  { %21 = vsyncpa [#allocation12], 0 }
   0xa   :  { %22 = vsyncpa [#allocation4], 0 }
   0xb   :  { %24 = vsyncpa [#allocation4 + $0x1], 0  ;;  %s3168_s17 = smov 0   ;;  %s3170_s18 = smov 0  }
   0xc   :  { %s3172_s19 = smov 0   ;;  %s3174_s20 = smov 0  }
   0xd LB: > { %s3093_s21 = smov [#allocation5]   ;;  %s3189_s23 = sadd.s32 4294967295, %s3091_s20   ;;  %s3091_s20 = sphi %s3174_s20, %s3758_s20   ;;  %s3087_s19 = sphi %s3172_s19, %s3757_s19   ;;  %s3083_s18 = sphi %s3170_s18, %s3756_s18   ;;  %s3079_s17 = sphi %s3168_s17, %s3755_s17  }
   0xe   : > { %s309_s22 = sshll.u32 %s3093_s21, 4  ;;  %p2123_p0 = scmp.ge.s32.totalorder %s3091_s20, 1  ;;  %s3194_s22 = int_to_ptr.vmem [resolvable:$true] %s309_s22 }
   0xf   : > { %p3726_p1 = scmp.eq.s32.totalorder %s3189_s23, 0  ;;  %p297_p2 = scmp.lt.s32.totalorder %s3091_s20, 3 }
  0x10   : > { %s3094_s25 = smov [#allocation8]   ;;  %s3095_s28 = smov [#allocation7]  }
  0x11   : > { %p3196_p3 = pnand %p2123_p0, %p297_p2  ;;  %s341_s26 = sshll.u32 %s3094_s25, 4  ;;  %s3209_s26 = int_to_ptr.vmem [resolvable:$true] %s341_s26 }
  0x12   : > { %s325_s29 = sshll.u32 %s3095_s28, 4  ;;  %s3735_s1 = sld [smem:[#allocation19_spill]]  ;;  %s3211_s29 = int_to_ptr.vmem [resolvable:$true] %s325_s29 }
  0x13   : > { %s3733_s24 = scalar_select %p3196_p3, 1, 0 }
  0x14   : > { %p2658_p5 = pneg %p3196_p3 }
  0x16   : > { %p3205_p6 = pnand %p2658_p5, %p3726_p1 }
  0x18   : > { %s2843_s13 = scalar_lea.hbm %s3735_s1, 3072  ;;  %p3221_p8 = pneg %p3205_p6 }
  0x19   : > { %p2844_p7 = scmp.ne.s32.totalorder %s3735_s1, %s2843_s13  ;;  %p2850_p11 = scmp.lt.u32.totalorder %s2843_s13, %s3735_s1 }
  0x1b   : > { %p2846_p9 = pnand %p3221_p8, %p2844_p7 }
  0x1d   : > { %p2847_p10 = pneg %p2846_p9 }
  0x1f   : > { %p2852_p12 = pnand %p2850_p11, %p2847_p10 }
  0x21   : > { %2855 = shalt.err (!%p2852_p12)
}
  0x22   : > { %s2856_s28 = scalar_lea.vmem %s3194_s22, 3072  ;;  %p2864_p5 = scmp.lt.s32.totalorder %s3194_s22, %s3194_s22 }
  0x23   : > { %p2857_p13 = scmp.ne.s32.totalorder %s3194_s22, %s2856_s28  ;;  %p2865_p4 = scmp.lt.s32.totalorder %s2856_s28, %s2856_s28 }
  0x25   : > { %p2859_p0 = pnand %p2857_p13, %p3221_p8  ;;  %p2866_p7 = por %p2865_p4, %p2864_p5 }
  0x27   : > { %p2860_p2 = pneg %p2859_p0 }
  0x29   : > { %p2867_p9 = pnand %p2866_p7, %p2860_p2 }
  0x2b   : > { %2870 = shalt.err (!%p2867_p9)
}
  0x2c   : > { %s3096_s30 = smov 64   ;;  %s3097_s12 = smov 4  }
  0x2d   : > { %2661 = dma.hbm_to_vmem [thread:$0]  (!%p3205_p6), %s3735_s1, 3072, %s3194_s22, [#allocation6], %s3096_s30, %s3096_s30, %s3097_s12  }
  0x2e   : > { %s2871_s25 = scalar_lea.hbm %s3718_s5, 1024 }
  0x2f   : > { %p2872_p4 = scmp.ne.s32.totalorder %s3718_s5, %s2871_s25  ;;  %p2878_p12 = scmp.lt.u32.totalorder %s2871_s25, %s3718_s5 }
  0x31   : > { %p2874_p10 = pnand %p2872_p4, %p3221_p8 }
  0x33   : > { %p2875_p11 = pneg %p2874_p10 }
  0x35   : > { %p2880_p13 = pnand %p2878_p12, %p2875_p11 }
  0x37   : > { %2883 = shalt.err (!%p2880_p13)
}
  0x38   : > { %s2884_s22 = scalar_lea.vmem %s3209_s26, 1024  ;;  %p2892_p7 = scmp.lt.s32.totalorder %s3209_s26, %s3209_s26 }
  0x39   : > { %p2885_p0 = scmp.ne.s32.totalorder %s3209_s26, %s2884_s22  ;;  %p2893_p9 = scmp.lt.s32.totalorder %s2884_s22, %s2884_s22 }
  0x3b   : > { %p2887_p2 = pnand %p2885_p0, %p3221_p8  ;;  %p2894_p4 = por %p2893_p9, %p2892_p7 }
  0x3d   : > { %p2888_p5 = pneg %p2887_p2 }
  0x3f   : > { %p2895_p10 = pnand %p2894_p4, %p2888_p5 }
  0x41   : > { %2898 = shalt.err (!%p2895_p10)
}
  0x42   : > { %2667 = dma.hbm_to_vmem [thread:$0]  (!%p3205_p6), %s3718_s5, 1024, %s3209_s26, [#allocation9], %s3096_s30, %s3096_s30, %s3097_s12  }
  0x43   : > { %s2899_s14 = scalar_lea.hbm %s3716_s3, 3072 }
  0x44   : > { %p2900_p11 = scmp.ne.s32.totalorder %s3716_s3, %s2899_s14  ;;  %p2906_p0 = scmp.lt.u32.totalorder %s2899_s14, %s3716_s3 }
  0x46   : > { %p2902_p12 = pnand %p2900_p11, %p3221_p8 }
  0x48   : > { %p2903_p13 = pneg %p2902_p12 }
  0x4a   : > { %p2908_p2 = pnand %p2906_p0, %p2903_p13 }
  0x4c   : > { %2911 = shalt.err (!%p2908_p2)
}
  0x4d   : > { %s2912_s26 = scalar_lea.vmem %s3211_s29, 3072  ;;  %p2920_p4 = scmp.lt.s32.totalorder %s3211_s29, %s3211_s29 }
  0x4e   : > { %p2913_p5 = scmp.ne.s32.totalorder %s3211_s29, %s2912_s26  ;;  %p2921_p10 = scmp.lt.s32.totalorder %s2912_s26, %s2912_s26 }
  0x50   : > { %p2915_p7 = pnand %p2913_p5, %p3221_p8  ;;  %p2922_p11 = por %p2921_p10, %p2920_p4 }
  0x52   : > { %p2916_p9 = pneg %p2915_p7 }
  0x54   : > { %p2923_p12 = pnand %p2922_p11, %p2916_p9 }
  0x56   : > { %2926 = shalt.err (!%p2923_p12)
}
  0x57   : > { %2664 = dma.hbm_to_vmem [thread:$0]  (!%p3205_p6), %s3716_s3, 3072, %s3211_s29, [#allocation6], %s3096_s30, %s3096_s30, %s3097_s12  }
  0x58   : > { %s3098_s10 = smov [#allocation10]   ;;  %s3099_s13 = smov [#allocation11]  }
  0x59   : > { %s357_s11 = sshll.u32 %s3098_s10, 4  ;;  %s373_s14 = sshll.u32 %s3099_s13, 4  ;;  %s358_s11 = int_to_ptr.vmem [resolvable:$true] %s357_s11  ;;  %s374_s14 = int_to_ptr.vmem [resolvable:$true] %s373_s14 }
  0x5a   : > { %s2927_s25 = scalar_lea.hbm %s3720_s7, 3072 }
  0x5b   : > { %p2928_p13 = scmp.ne.s32.totalorder %s3720_s7, %s2927_s25  ;;  %p2934_p5 = scmp.lt.u32.totalorder %s2927_s25, %s3720_s7 }
  0x5d   : > { %p2930_p0 = pnand %p2928_p13, %p3221_p8 }
  0x5f   : > { %p2931_p2 = pneg %p2930_p0 }
  0x61   : > { %p2936_p7 = pnand %p2934_p5, %p2931_p2 }
  0x63   : > { %2939 = shalt.err (!%p2936_p7)
}
  0x64   : > { %s2940_s29 = scalar_lea.vmem %s358_s11, 3072  ;;  %p2948_p11 = scmp.lt.s32.totalorder %s358_s11, %s358_s11 }
  0x65   : > { %p2941_p9 = scmp.ne.s32.totalorder %s358_s11, %s2940_s29  ;;  %p2949_p12 = scmp.lt.s32.totalorder %s2940_s29, %s2940_s29 }
  0x67   : > { %p2943_p4 = pnand %p2941_p9, %p3221_p8  ;;  %p2950_p1 = por %p2949_p12, %p2948_p11 }
  0x69   : > { %p2944_p10 = pneg %p2943_p4 }
  0x6b   : > { %p2951_p3 = pnand %p2950_p1, %p2944_p10 }
  0x6d   : > { %2954 = shalt.err (!%p2951_p3)
}
  0x6e   : > { %2670 = dma.hbm_to_vmem [thread:$0]  (!%p3205_p6), %s3720_s7, 3072, %s358_s11, [#allocation9], %s3096_s30, %s3096_s30, %s3097_s12  }
  0x6f   : > { %s2955_s15 = scalar_lea.hbm %s3722_s9, 3072 }
  0x70   : > { %p2956_p1 = scmp.ne.s32.totalorder %s3722_s9, %s2955_s15  ;;  %p2962_p0 = scmp.lt.u32.totalorder %s2955_s15, %s3722_s9 }
  0x72   : > { %p2958_p3 = pnand %p2956_p1, %p3221_p8 }
  0x74   : > { %p2959_p13 = pneg %p2958_p3 }
  0x76   : > { %p2964_p2 = pnand %p2962_p0, %p2959_p13 }
  0x78   : > { %2967 = shalt.err (!%p2964_p2)
}
  0x79   : > { %s2968_s22 = scalar_lea.vmem %s374_s14, 3072  ;;  %p2976_p4 = scmp.lt.s32.totalorder %s374_s14, %s374_s14 }
  0x7a   : > { %p2969_p5 = scmp.ne.s32.totalorder %s374_s14, %s2968_s22  ;;  %p2977_p10 = scmp.lt.s32.totalorder %s2968_s22, %s2968_s22 }
  0x7c   : > { %p2971_p7 = pnand %p2969_p5, %p3221_p8  ;;  %p2978_p11 = por %p2977_p10, %p2976_p4 }
  0x7e   : > { %p2972_p9 = pneg %p2971_p7 }
  0x80   : > { %p2979_p12 = pnand %p2978_p11, %p2972_p9 }
  0x82   : > { %2982 = shalt.err (!%p2979_p12)
}
  0x83   : > { %2673 = dma.hbm_to_vmem [thread:$0]  (!%p3205_p6), %s3722_s9, 3072, %s374_s14, [#allocation12], %s3096_s30, %s3096_s30, %s3097_s12  }
  0x84   : > { %s2122_s27 = sadd.s32 4294967294, %s3091_s20   ;;  %s3341_s16 = sadd.s32 1, %s3091_s20  }
  0x85   : > { %s37_s1 = sadd.s32 1, %s3087_s19  ;;  %s34_s8 = ssub.s32 %s3091_s20, %s3341_s16 }
  0x86   : > { %p44_p8 = scmp.ne.s32.totalorder %s3087_s19, %s3083_s18  ;;  %p35_p1 = scmp.eq.s32.totalorder %s34_s8, 0 }
  0x87   : > { %p45_p3 = scmp.eq.s32.totalorder %s3091_s20, 0  ;;  %p50_p13 = scmp.ne.s32.totalorder %s3083_s18, %s3079_s17 }
  0x88   : > { %p284_p0 = scmp.eq.s32.totalorder %s3189_s23, 1  ;;  %p3737_p5 = scmp.eq.s32.totalorder %s3189_s23, 0 }
  0x89   : > { %s3353_s10 = scalar_select %p35_p1, %s3087_s19, %s37_s1  }
  0x8a   : > { %p46_p2 = por %p45_p3, %p44_p8  ;;  %p3357_p7 = por %p3737_p5, %p50_p13 }
  0x8b   : > { %p3361_p6 = por %p284_p0, %p44_p8  ;;  %p290_p9 = scmp.eq.s32.totalorder %s2122_s27, 1 }
  0x8c   : > { %p2687_p4 = scmp.lt.s32.totalorder %s3091_s20, 2  ;;  %s390_s12 = sand.u32 1, %s3087_s19  }
  0x8d   : > { %s3739_s30 = scalar_select %p3361_p6, 1, 0 }
  0x8e   : > { %p3367_p10 = por %p290_p9, %p50_p13  ;;  %s2130_s15 = sshll.u32 %s390_s12, 4 }
  0x8f   : > { %s2255_s21 = sshll.u32 %s3091_s20, 8  ;;  %s394_s22 = scalar_lea.vmem [#allocation2], %s2130_s15 }
  0x90   : > { %s3740_s14 = scalar_select %p3367_p10, 1, 0 }
  0x91   : > { %s3375_s26 = scalar_lea.hbm %s3713_s0, %s2255_s21  ;;  %s401_s11 = sshll.u32 %s394_s22, 4  ;;  %s3381_s11 = int_to_ptr.vmem [resolvable:$true] %s401_s11 }
  0x92   : > { %p3377_p11 = pnand %p2687_p4, %p46_p2  ;;  %s3383_s27 = scalar_lea.sflag [#allocation3], %s390_s12 }
  0x93   : > { %s2983_s1 = scalar_lea.hbm %s3375_s26, 256  ;;  %s2988_s21 = scalar_lea.hbm %s3713_s0, 512 }
  0x94   : > { %p2984_p12 = scmp.ne.s32.totalorder %s3375_s26, %s2983_s1  ;;  %p2985_p8 = pneg %p3377_p11 }
  0x95   : > { %p2989_p13 = scmp.lt.u32.totalorder %s3375_s26, %s3713_s0  ;;  %p2990_p0 = scmp.lt.u32.totalorder %s2988_s21, %s2983_s1 }
  0x96   : > { %p2986_p1 = pnand %p2985_p8, %p2984_p12  ;;  %p2992_p5 = scmp.lt.u32.totalorder %s2983_s1, %s3375_s26 }
  0x97   : > { %p2991_p2 = por %p2990_p0, %p2989_p13 }
  0x98   : > { %p2987_p3 = pneg %p2986_p1 }
  0x99   : > { %p2993_p9 = por %p2992_p5, %p2991_p2 }
  0x9b   : > { %p2994_p4 = pnand %p2993_p9, %p2987_p3 }
  0x9d   : > { %2997 = shalt.err (!%p2994_p4)
}
  0x9e   : > { %s2998_s12 = scalar_lea.vmem %s3381_s11, 256  ;;  %s3100_s22 = smov [#allocation2]  }
  0x9f   : > { %p2999_p12 = scmp.ne.s32.totalorder %s3381_s11, %s2998_s12  ;;  %s3003_s8 = sshll.u32 %s3100_s22, 4  ;;  %s3004_s8 = int_to_ptr.vmem [resolvable:$false] %s3003_s8 }
  0xa0   : > { %s3005_s15 = scalar_lea.vmem %s3004_s8, 512  ;;  %p3006_p6 = scmp.lt.s32.totalorder %s3381_s11, %s3004_s8 }
  0xa1   : > { %p3001_p1 = pnand %p2999_p12, %p2985_p8  ;;  %p3007_p13 = scmp.lt.s32.totalorder %s3005_s15, %s2998_s12 }
  0xa3   : > { %p3002_p10 = pneg %p3001_p1  ;;  %p3008_p0 = por %p3007_p13, %p3006_p6 }
  0xa5   : > { %p3009_p2 = pnand %p3008_p0, %p3002_p10 }
  0xa7   : > { %3012 = shalt.err (!%p3009_p2)
}
  0xa8   : > { %s3101_s1 = smov 128   ;;  %s3102_s21 = smov 8  }
  0xa9   : > { %2677 = dma.hbm_to_vmem [thread:$0]  (!%p3377_p11), %s3375_s26, 256, %s3381_s11, %s3383_s27, %s3101_s1, %s3101_s1, %s3102_s21  }
  0xaa   : > { %p3742_p8 = scmp.ne.s32.totalorder %s3733_s24, 0 }
  0xab   : > { %s3414_s25 = sand.u32 (!%p3742_p8), 1, %s3083_s18  }
  0xac   : > { %413 = sbr.rel (%p3742_p8) target bundleno = 1269 (0x4f5), region = 64  ;;  %s2134_s28 = sshll.u32 (!%p3742_p8), %s3414_s25, 4 }
  0xad   : > { %s416_s12 = scalar_lea.sflag (!%p3742_p8), [#allocation3], %s3414_s25  ;;  %s3420_s22 = scalar_lea.vmem (!%p3742_p8), [#allocation2], %s2134_s28 }
  0xb3   : > { %3058 = dma.done.wait (%p3357_p7), %s416_s12, 256  }
  0xb4   : > { %3060 = vsyncadd (%p3357_p7), %s416_s12, 4294967040  ;;  %p3743_p6 = scmp.eq.s32.totalorder %s3189_s23, 0 }
  0xb6   : > { %3062 = dma.done.wait (%p3743_p6), [#allocation6], 6144   ;;  %p3744_p10 = pmov %p3743_p6 }
  0xb7   : > { %p3745_p11 = pmov %p3743_p6 }
  0xb8   : > { %3064 = vsyncadd (%p3744_p10), [#allocation6], 4294961152 }
  0xb9   : > { %3066 = dma.done.wait (%p3745_p11), [#allocation9], 4096   ;;  %p3746_p3 = pmov %p3743_p6 }
  0xbb   : > { %3068 = vsyncadd (%p3746_p3), [#allocation9], 4294963200  ;;  %p3747_p5 = pmov %p3746_p3 }
  0xbc   : > { %p3748_p9 = pmov %p3746_p3 }
  0xbd   : > { %3070 = dma.done.wait (%p3747_p5), [#allocation12], 3072  }
  0xbe   : > { %3072 = vsyncadd (%p3748_p9), [#allocation12], 4294964224  ;;  %v3103_v0 = vmov 0.0   ;;  %vm3104_vm0 = vmmov 0   ;;  %v2739_v1 = vld [vmem:[#allocation5 + $0x80] sm:$0xff]   ;;  %v2741_v3 = vld [vmem:[#allocation5 + $0x88] sm:$0xff]   ;;  %v595_v44 = vlaneseq }
  0xbf   : > { %2374 = vmatprep.subr.bf16.mxu0 %v3103_v0  ;;  %2394 = vmatprep.subr.bf16.mxu1 %v3103_v0  ;;  %v2740_v2 = vld [vmem:[#allocation5] sm:$0xff]   ;;  %v2742_v4 = vld [vmem:[#allocation5 + $0x8] sm:$0xff]   ;;  %v2743_v5 = vld [vmem:[#allocation5 + $0x90] sm:$0xff]   ;;  %s3749_s1 = sld [smem:[#allocation20_spill]]  ;;  %s2256_s24 = sshll.u32 %s3189_s23, 8 }
  0xc0   : > { %2390 = vmatprep.mubr.msk.bf16.mxu0 %vm3104_vm0, %v3103_v0  ;;  %2410 = vmatprep.mubr.msk.bf16.mxu1 %vm3104_vm0, %v3103_v0  ;;  %v2744_v6 = vld [vmem:[#allocation5 + $0x10] sm:$0xff]   ;;  %v2745_v7 = vld [vmem:[#allocation5 + $0x98] sm:$0xff]   ;;  %v2747_v9 = vld [vmem:[#allocation5 + $0xa0] sm:$0xff]   ;;  %v3497_v45 = vshrl.u32 %v595_v44, 7  ;;  %s477_s13 = scalar_lea.vmem [#allocation13], %s2134_s28  ;;  %s3751_s27 = sld [smem:[#allocation22_spill]] }
  0xc1   : > { %2375 = vmatpush3.bf16.msra.mxu0 %v2739_v1  ;;  %2395 = vmatpush3.bf16.msra.mxu1 %v2740_v2  ;;  %v2746_v8 = vld [vmem:[#allocation5 + $0x18] sm:$0xff]   ;;  %v2748_v10 = vld [vmem:[#allocation5 + $0x20] sm:$0xff]   ;;  %v2749_v11 = vld [vmem:[#allocation5 + $0xa8] sm:$0xff]   ;;  %s2001_s26 = sshll.u32 %s477_s13, 4  ;;  %s1988_s23 = scalar_lea.sflag [#allocation4], %s3414_s25  ;;  %s3669_s26 = int_to_ptr.vmem [resolvable:$true] %s2001_s26 }
  0xc2   : > { %2376 = vmatprep.subr.bf16.mxu0 %v3103_v0  ;;  %2396 = vmatprep.subr.bf16.mxu1 %v3103_v0  ;;  %v2750_v12 = vld [vmem:[#allocation5 + $0x28] sm:$0xff]   ;;  %v2751_v13 = vld [vmem:[#allocation5 + $0xb0] sm:$0xff]   ;;  %v2753_v15 = vld [vmem:[#allocation5 + $0xb8] sm:$0xff]   ;;  %vm705_vm1 = vcmp.lt.s32.totalorder %v3497_v45, 2  ;;  %vm708_vm2 = vcmp.ge.s32.totalorder %v3497_v45, 2  ;;  %vm822_vm3 = vcmp.lt.s32.totalorder %v3497_v45, 1 }
  0xc3   : > { %v2752_v14 = vld [vmem:[#allocation5 + $0x30] sm:$0xff]   ;;  %v480_v17 = vld [vmem:[%s3420_s22 + $0x8] sm:$0xff]  ;;  %v2755_v19 = vld [vmem:[#allocation5 + $0x40] sm:$0xff]   ;;  %vm825_vm4 = vcmp.ge.s32.totalorder %v3497_v45, 1  ;;  %vm1513_vm5 = vcmp.lt.s32.totalorder %v3497_v45, 4  ;;  %vm1516_vm6 = vcmp.ge.s32.totalorder %v3497_v45, 4 }
  0xc4   : > { %v479_v16 = vld [vmem:[%s3420_s22] sm:$0xff]  ;;  %v2754_v18 = vld [vmem:[#allocation5 + $0x38] sm:$0xff]   ;;  %v2756_v21 = vld [vmem:[#allocation5 + $0x48] sm:$0xff]   ;;  %s3750_s22 = sld [smem:[#allocation21_spill]]  ;;  %s3013_s28 = scalar_lea.vmem %s3669_s26, 256 }
  0xc5   : > { %2377 = vmatpush3.bf16.msra.mxu0 %v2741_v3  ;;  %2397 = vmatpush3.bf16.msra.mxu1 %v2742_v4  ;;  %v3460_v20 = vpack.c.bf16 %v480_v17, %v479_v16  ;;  %v2757_v22 = vld [vmem:[#allocation5 + $0x50] sm:$0xff]   ;;  %v2758_v23 = vld [vmem:[#allocation5 + $0x58] sm:$0xff]   ;;  %v2759_v24 = vld [vmem:[#allocation5 + $0x60] sm:$0xff]   ;;  %p3014_p7 = scmp.ne.s32.totalorder %s3669_s26, %s3013_s28  ;;  %p3752_p4 = scmp.ne.s32.totalorder %s3739_s30, 0 }
  0xc6   : > { %2378 = vmatprep.subr.bf16.mxu0 %v3103_v0  ;;  %2398 = vmatprep.subr.bf16.mxu1 %v3103_v0  ;;  %v2760_v25 = vld [vmem:[#allocation5 + $0x68] sm:$0xff]   ;;  %v2761_v26 = vld [vmem:[#allocation5 + $0x70] sm:$0xff]   ;;  %v2762_v27 = vld [vmem:[#allocation5 + $0x78] sm:$0xff]   ;;  %s3667_s8 = scalar_lea.hbm %s3751_s27, %s2256_s24  ;;  %s3105_s15 = smov [#allocation13]  }
  0xc7   : > { %v2763_v28 = vld [vmem:[#allocation7 + $0x80] sm:$0xff]   ;;  %v2765_v30 = vld [vmem:[#allocation7 + $0x88] sm:$0xff]   ;;  %v2767_v32 = vld [vmem:[#allocation7 + $0x90] sm:$0xff]   ;;  %p3015_p12 = pnand %p3014_p7, %p3752_p4 }
  0xc8   : > { %v2764_v29 = vld [vmem:[#allocation7] sm:$0xff]   ;;  %v2766_v31 = vld [vmem:[#allocation7 + $0x8] sm:$0xff]   ;;  %v2768_v33 = vld [vmem:[#allocation7 + $0x10] sm:$0xff]  }
  0xc9   : > { %2379 = vmatpush3.bf16.msra.mxu0 %v2743_v5  ;;  %2399 = vmatpush3.bf16.msra.mxu1 %v2744_v6  ;;  %v2769_v34 = vld [vmem:[#allocation7 + $0x98] sm:$0xff]   ;;  %v2771_v36 = vld [vmem:[#allocation7 + $0xa0] sm:$0xff]   ;;  %v2773_v38 = vld [vmem:[#allocation7 + $0xa8] sm:$0xff]   ;;  %p3016_p1 = pneg %p3015_p12 }
  0xca   : > { %2380 = vmatprep.subr.bf16.mxu0 %v3103_v0  ;;  %2400 = vmatprep.subr.bf16.mxu1 %v3103_v0  ;;  %v2770_v35 = vld [vmem:[#allocation7 + $0x18] sm:$0xff]   ;;  %v2772_v37 = vld [vmem:[#allocation7 + $0x20] sm:$0xff]   ;;  %v2774_v39 = vld [vmem:[#allocation7 + $0x28] sm:$0xff]  }
  0xcb   : > { %v2775_v40 = vld [vmem:[#allocation7 + $0xb0] sm:$0xff]   ;;  %v2777_v42 = vld [vmem:[#allocation7 + $0xb8] sm:$0xff]   ;;  %v2141_v46 = vld [vmem:[%s3715_s2] ss:$0 sm:$0xff] }
  0xcc   : > { %v2776_v41 = vld [vmem:[#allocation7 + $0x30] sm:$0xff]   ;;  %v2778_v43 = vld [vmem:[#allocation7 + $0x38] sm:$0xff]   ;;  %v2781_v17 = vld [vmem:[#allocation7 + $0x48] sm:$0xff]  }
  0xcd   : > { %2381 = vmatpush3.bf16.msra.mxu0 %v2745_v7  ;;  %2401 = vmatpush3.bf16.msra.mxu1 %v2746_v8  ;;  %v2808_v44 = vld [vmem:[#allocation10 + $0x30] sm:$0xff]  }
  0xce   : > { %2382 = vmatprep.subr.bf16.mxu0 %v3103_v0  ;;  %2402 = vmatprep.subr.bf16.mxu1 %v3103_v0 }
  0xd1   : > { %2383 = vmatpush3.bf16.msra.mxu0 %v2747_v9  ;;  %2403 = vmatpush3.bf16.msra.mxu1 %v2748_v10 }
  0xd2   : > { %2384 = vmatprep.subr.bf16.mxu0 %v3103_v0  ;;  %2404 = vmatprep.subr.bf16.mxu1 %v3103_v0 }
  0xd5   : > { %2385 = vmatpush3.bf16.msra.mxu0 %v2749_v11  ;;  %2405 = vmatpush3.bf16.msra.mxu1 %v2750_v12 }
  0xd6   : > { %2386 = vmatprep.subr.bf16.mxu0 %v3103_v0  ;;  %2406 = vmatprep.subr.bf16.mxu1 %v3103_v0 }
  0xd9   : > { %2387 = vmatpush3.bf16.msra.mxu0 %v2751_v13  ;;  %2407 = vmatpush3.bf16.msra.mxu1 %v2752_v14  ;;  %v2779_v14 = vld [vmem:[#allocation7 + $0x40] sm:$0xff]  }
  0xda   : > { %2388 = vmatprep.subr.bf16.mxu0 %v3103_v0  ;;  %2408 = vmatprep.subr.bf16.mxu1 %v3103_v0 }
  0xdd   : > { %2389 = vmatpush3.bf16.msra.mxu0 %v2753_v15  ;;  %2409 = vmatpush3.bf16.msra.mxu1 %v2754_v18  ;;  %v2780_v15 = vld [vmem:[#allocation8] sm:$0xff]   ;;  %v2782_v18 = vld [vmem:[#allocation8 + $0x8] sm:$0xff]  }
  0xde   : > { %2414 = vmatprep.subr.bf16.mxu0 %v3103_v0  ;;  %2434 = vmatprep.subr.bf16.mxu1 %v3103_v0 }
  0xe0   : > { %2391 = vmatmul.mubr.bf16.vlgmr.msra.gmra.mrb[0].mxu0 %v3460_v20  ;;  %2411 = vmatmul.mubr.bf16.vlgmr.msra.gmra.mrb[0].mxu1 %v3460_v20 }
  0xe1   : > { %2415 = vmatpush3.bf16.msra.mxu0 %v2755_v19  ;;  %2430 = vmatprep.mubr.msk.bf16.mxu0 %vm3104_vm0, %v3103_v0  ;;  %v2783_v19 = vld [vmem:[#allocation7 + $0x50] sm:$0xff]  }
  0xe2   : > { %2416 = vmatprep.subr.bf16.mxu0 %v3103_v0  ;;  %2450 = vmatprep.mubr.msk.bf16.mxu1 %vm3104_vm0, %v3103_v0 }
  0xe3   : > { %2435 = vmatpush3.bf16.msra.mxu1 %v2763_v28  ;;  %v2791_v28 = vld [vmem:[#allocation7 + $0x70] sm:$0xff]  }
  0xe4   : > { %2436 = vmatprep.subr.bf16.mxu1 %v3103_v0 }
  0xe5   : > { %2417 = vmatpush3.bf16.msra.mxu0 %v2756_v21  ;;  %v2784_v21 = vld [vmem:[#allocation8 + $0x10] sm:$0xff]  }
  0xe6   : > { %2418 = vmatprep.subr.bf16.mxu0 %v3103_v0 }
  0xe7   : > { %2437 = vmatpush3.bf16.msra.mxu1 %v2765_v30  ;;  %v2793_v30 = vld [vmem:[#allocation7 + $0x78] sm:$0xff]  }
  0xe8   : > { %2438 = vmatprep.subr.bf16.mxu1 %v3103_v0 }
  0xe9   : > { %2419 = vmatpush3.bf16.msra.mxu0 %v2757_v22  ;;  %v2785_v22 = vld [vmem:[#allocation7 + $0x58] sm:$0xff]  }
  0xea   : > { %2420 = vmatprep.subr.bf16.mxu0 %v3103_v0 }
  0xeb   : > { %2439 = vmatpush3.bf16.msra.mxu1 %v2767_v32  ;;  %v2795_v32 = vld [vmem:[#allocation10 + $0x80] sm:$0xff]  }
  0xec   : > { %2440 = vmatprep.subr.bf16.mxu1 %v3103_v0 }
  0xed   : > { %2421 = vmatpush3.bf16.msra.mxu0 %v2758_v23  ;;  %v2786_v23 = vld [vmem:[#allocation8 + $0x18] sm:$0xff]  }
  0xee   : > { %2422 = vmatprep.subr.bf16.mxu0 %v3103_v0 }
  0xef   : > { %2441 = vmatpush3.bf16.msra.mxu1 %v2769_v34  ;;  %v2797_v34 = vld [vmem:[#allocation10 + $0x88] sm:$0xff]  }
  0xf0   : > { %2442 = vmatprep.subr.bf16.mxu1 %v3103_v0 }
  0xf1   : > { %2423 = vmatpush3.bf16.msra.mxu0 %v2759_v24  ;;  %v2787_v24 = vld [vmem:[#allocation7 + $0x60] sm:$0xff]  }
  0xf2   : > { %2424 = vmatprep.subr.bf16.mxu0 %v3103_v0 }
  0xf3   : > { %2443 = vmatpush3.bf16.msra.mxu1 %v2771_v36  ;;  %v2799_v36 = vld [vmem:[#allocation10 + $0x90] sm:$0xff]  }
  0xf4   : > { %2444 = vmatprep.subr.bf16.mxu1 %v3103_v0 }
  0xf5   : > { %2425 = vmatpush3.bf16.msra.mxu0 %v2760_v25  ;;  %v2788_v25 = vld [vmem:[#allocation8 + $0x20] sm:$0xff]  }
  0xf6   : > { %2426 = vmatprep.subr.bf16.mxu0 %v3103_v0 }
  0xf7   : > { %2445 = vmatpush3.bf16.msra.mxu1 %v2773_v38  ;;  %v2802_v38 = vld [vmem:[#allocation10 + $0x18] sm:$0xff]  }
  0xf8   : > { %2446 = vmatprep.subr.bf16.mxu1 %v3103_v0 }
  0xf9   : > { %2427 = vmatpush3.bf16.msra.mxu0 %v2761_v26  ;;  %v2789_v26 = vld [vmem:[#allocation7 + $0x68] sm:$0xff]  }
  0xfa   : > { %2428 = vmatprep.subr.bf16.mxu0 %v3103_v0 }
  0xfb   : > { %2447 = vmatpush3.bf16.msra.mxu1 %v2775_v40  ;;  %v2804_v40 = vld [vmem:[#allocation10 + $0x20] sm:$0xff]  }
  0xfc   : > { %2448 = vmatprep.subr.bf16.mxu1 %v3103_v0 }
  0xfd   : > { %2429 = vmatpush3.bf16.msra.mxu0 %v2762_v27  ;;  %v2790_v27 = vld [vmem:[#allocation8 + $0x28] sm:$0xff]  }
  0xfe   : > { %2454 = vmatprep.subr.bf16.mxu0 %v3103_v0 }
  0xff   : > { %2449 = vmatpush3.bf16.msra.mxu1 %v2777_v42  ;;  %v2806_v42 = vld [vmem:[#allocation10 + $0x28] sm:$0xff]  }
 0x100   : > { %2431 = vmatmul.mubr.bf16.vlgmr.msra.gmra.mrb[4].mxu0 %v3460_v20  ;;  %2474 = vmatprep.subr.bf16.mxu1 %v3103_v0 }
 0x101   : > { %2470 = vmatprep.mubr.msk.bf16.mxu0 %vm3104_vm0, %v3103_v0  ;;  %2455 = vmatpush3.bf16.msra.mxu0 %v2764_v29  ;;  %v2792_v29 = vld [vmem:[#allocation8 + $0x30] sm:$0xff]  }
 0x102   : > { %2456 = vmatprep.subr.bf16.mxu0 %v3103_v0 }
 0x105   : > { %2457 = vmatpush3.bf16.msra.mxu0 %v2766_v31  ;;  %v2794_v31 = vld [vmem:[#allocation8 + $0x38] sm:$0xff]  }
 0x106   : > { %2458 = vmatprep.subr.bf16.mxu0 %v3103_v0 }
 0x109   : > { %2459 = vmatpush3.bf16.msra.mxu0 %v2768_v33  ;;  %v2796_v33 = vld [vmem:[#allocation10] sm:$0xff]  }
 0x10a   : > { %2460 = vmatprep.subr.bf16.mxu0 %v3103_v0 }
 0x10d   : > { %2461 = vmatpush3.bf16.msra.mxu0 %v2770_v35  ;;  %v2798_v35 = vld [vmem:[#allocation10 + $0x8] sm:$0xff]  }
 0x10e   : > { %2462 = vmatprep.subr.bf16.mxu0 %v3103_v0 }
 0x111   : > { %2463 = vmatpush3.bf16.msra.mxu0 %v2772_v37  ;;  %v2801_v37 = vld [vmem:[#allocation10 + $0x98] sm:$0xff]  }
 0x112   : > { %2464 = vmatprep.subr.bf16.mxu0 %v3103_v0 }
 0x115   : > { %2465 = vmatpush3.bf16.msra.mxu0 %v2774_v39  ;;  %v2803_v39 = vld [vmem:[#allocation10 + $0xa0] sm:$0xff]  }
 0x116   : > { %2466 = vmatprep.subr.bf16.mxu0 %v3103_v0 }
 0x119   : > { %2467 = vmatpush3.bf16.msra.mxu0 %v2776_v41  ;;  %v2805_v41 = vld [vmem:[#allocation10 + $0xa8] sm:$0xff]  }
 0x11a   : > { %2468 = vmatprep.subr.bf16.mxu0 %v3103_v0 }
 0x11d   : > { %2469 = vmatpush3.bf16.msra.mxu0 %v2778_v43  ;;  %v2807_v43 = vld [vmem:[#allocation10 + $0xb0] sm:$0xff]  }
 0x11e   : > { %2494 = vmatprep.subr.bf16.mxu0 %v3103_v0 }
 0x1b3   : > { %v588_v47 = vpop.f32.mrb[0].mxu0  ;;  %v696_v48 = vpop.f32.mrb[0].mxu1 }
 0x1b4   : > { %v2392_v49 = vpop.f32.mrb[1].mxu0  ;;  %v703_v50 = vrot.slane %v696_v48, 6  ;;  %v2412_v51 = vpop.f32.mrb[1].mxu1  ;;  %v589_v58 = vadd.f32 %v2141_v46, %v588_v47  ;;  %v2810_v47 = vld [vmem:[#allocation10 + $0x38] sm:$0xff]  }
 0x1b5   : > { %v591_v52 = vpop.f32.mrb[2].mxu0  ;;  %v699_v54 = vpop.f32.mrb[2].mxu1 }
 0x1b6   : > { %v592_v53 = vadd.f32 %v2141_v46, %v591_v52  ;;  %v2393_v55 = vpop.f32.mrb[3].mxu0  ;;  %v704_v56 = vrot.slane %v699_v54, 6  ;;  %v2413_v57 = vpop.f32.mrb[3].mxu1  ;;  %v2809_v46 = vld [vmem:[#allocation10 + $0xb8] sm:$0xff]   ;;  %v2166_v52 = vld [vmem:[%s3717_s4] ss:$0 sm:$0xff] }
 0x1b8   : > { %v706_v59 = vsel %vm705_vm1, %v703_v50, %v704_v56  ;;  %v707_v60 = vsel %vm705_vm1, %v704_v56, %v703_v50 }
 0x1b9   : > { %v710_v61 = vsel %vm708_vm2, %v707_v60, 0.0  ;;  %v713_v62 = vadd.f32 %v706_v59, %v592_v53 }
 0x1ba   : > { %v712_v63 = vadd.f32 %v710_v61, %v589_v58 }
 0x1d3   : > { %v813_v1 = vpop.f32.mrb[4].mxu0 }
 0x1d4   : > { %v2432_v2 = vpop.f32.mrb[5].mxu0  ;;  %v820_v4 = vrot.slane %v813_v1, 7 }
 0x1d5   : > { %v816_v3 = vpop.f32.mrb[6].mxu0 }
 0x1d6   : > { %v821_v5 = vrot.slane %v816_v3, 7  ;;  %v2433_v6 = vpop.f32.mrb[7].mxu0 }
 0x1d8   : > { %v823_v7 = vsel %vm822_vm3, %v820_v4, %v821_v5  ;;  %v824_v8 = vsel %vm822_vm3, %v821_v5, %v820_v4 }
 0x1d9   : > { %v827_v9 = vsel %vm825_vm4, %v824_v8, 0.0  ;;  %v830_v10 = vadd.f32 %v823_v7, %v713_v62 }
 0x1da   : > { %v829_v11 = vadd.f32 %v827_v9, %v712_v63 }
 0x1db   : > { %v832_v12 = vmax.f32 %v830_v10, 0.0 }
 0x1dc   : > { %v831_v13 = vmax.f32 %v829_v11, 0.0 }
 0x1de   : > { %v833_v16 = vpack.c.bf16 %v832_v12, %v831_v13  ;;  %v2191_v12 = vld [vmem:[%s3719_s6] ss:$0 sm:$0xff] }
 0x1e0   : > { %2451 = vmatmul.mubr.bf16.vlgmr.msra.gmra.mrb[4].mxu1 %v833_v16  ;;  %2471 = vmatmul.mubr.bf16.vlgmr.msra.gmra.mrb[8].mxu0 %v833_v16 }
 0x1e1   : > { %2475 = vmatpush3.bf16.msra.mxu1 %v2779_v14  ;;  %2495 = vmatpush3.bf16.msra.mxu0 %v2780_v15 }
 0x1e2   : > { %2476 = vmatprep.subr.bf16.mxu1 %v3103_v0  ;;  %2496 = vmatprep.subr.bf16.mxu0 %v3103_v0 }
 0x1e3   : > { %2490 = vmatprep.mubr.msk.bf16.mxu1 %vm3104_vm0, %v3103_v0  ;;  %2510 = vmatprep.mubr.msk.bf16.mxu0 %vm3104_vm0, %v3103_v0 }
 0x1e5   : > { %2477 = vmatpush3.bf16.msra.mxu1 %v2781_v17  ;;  %2497 = vmatpush3.bf16.msra.mxu0 %v2782_v18 }
 0x1e6   : > { %2478 = vmatprep.subr.bf16.mxu1 %v3103_v0  ;;  %2498 = vmatprep.subr.bf16.mxu0 %v3103_v0 }
 0x1e9   : > { %2479 = vmatpush3.bf16.msra.mxu1 %v2783_v19  ;;  %2499 = vmatpush3.bf16.msra.mxu0 %v2784_v21 }
 0x1ea   : > { %2480 = vmatprep.subr.bf16.mxu1 %v3103_v0  ;;  %2500 = vmatprep.subr.bf16.mxu0 %v3103_v0 }
 0x1ed   : > { %2481 = vmatpush3.bf16.msra.mxu1 %v2785_v22  ;;  %2501 = vmatpush3.bf16.msra.mxu0 %v2786_v23 }
 0x1ee   : > { %2482 = vmatprep.subr.bf16.mxu1 %v3103_v0  ;;  %2502 = vmatprep.subr.bf16.mxu0 %v3103_v0 }
 0x1f1   : > { %2483 = vmatpush3.bf16.msra.mxu1 %v2787_v24  ;;  %2503 = vmatpush3.bf16.msra.mxu0 %v2788_v25 }
 0x1f2   : > { %2484 = vmatprep.subr.bf16.mxu1 %v3103_v0  ;;  %2504 = vmatprep.subr.bf16.mxu0 %v3103_v0 }
 0x1f5   : > { %2485 = vmatpush3.bf16.msra.mxu1 %v2789_v26  ;;  %2505 = vmatpush3.bf16.msra.mxu0 %v2790_v27 }
 0x1f6   : > { %2486 = vmatprep.subr.bf16.mxu1 %v3103_v0  ;;  %2506 = vmatprep.subr.bf16.mxu0 %v3103_v0 }
 0x1f9   : > { %2487 = vmatpush3.bf16.msra.mxu1 %v2791_v28  ;;  %2507 = vmatpush3.bf16.msra.mxu0 %v2792_v29  ;;  %v2811_v28 = vld [vmem:[#allocation10 + $0x40] sm:$0xff]  }
 0x1fa   : > { %2488 = vmatprep.subr.bf16.mxu1 %v3103_v0  ;;  %2508 = vmatprep.subr.bf16.mxu0 %v3103_v0 }
 0x1fd   : > { %2489 = vmatpush3.bf16.msra.mxu1 %v2793_v30  ;;  %2509 = vmatpush3.bf16.msra.mxu0 %v2794_v31  ;;  %v2812_v30 = vld [vmem:[#allocation10 + $0x48] sm:$0xff]   ;;  %v2813_v31 = vld [vmem:[#allocation10 + $0x50] sm:$0xff]  }
 0x1fe   : > { %2514 = vmatprep.subr.bf16.mxu1 %v3103_v0  ;;  %2534 = vmatprep.subr.bf16.mxu0 %v3103_v0 }
 0x200   : > { %2491 = vmatmul.mubr.bf16.vlgmr.msra.gmra.mrb[8].mxu1 %v833_v16  ;;  %2511 = vmatmul.mubr.bf16.vlgmr.msra.gmra.mrb[12].mxu0 %v3460_v20  ;;  %v2800_v20 = vld [vmem:[#allocation10 + $0x10] sm:$0xff]  }
 0x201   : > { %2530 = vmatprep.mubr.msk.bf16.mxu1 %vm3104_vm0, %v3103_v0  ;;  %2550 = vmatprep.mubr.msk.bf16.mxu0 %vm3104_vm0, %v3103_v0 }
 0x202   : > { %2515 = vmatpush3.bf16.msra.mxu1 %v2795_v32  ;;  %2535 = vmatpush3.bf16.msra.mxu0 %v2796_v33  ;;  %v2814_v32 = vld [vmem:[#allocation10 + $0x58] sm:$0xff]   ;;  %v2815_v33 = vld [vmem:[#allocation10 + $0x60] sm:$0xff]  }
 0x203   : > { %2516 = vmatprep.subr.bf16.mxu1 %v3103_v0  ;;  %2536 = vmatprep.subr.bf16.mxu0 %v3103_v0 }
 0x206   : > { %2517 = vmatpush3.bf16.msra.mxu1 %v2797_v34  ;;  %2537 = vmatpush3.bf16.msra.mxu0 %v2798_v35  ;;  %v2816_v34 = vld [vmem:[#allocation10 + $0x68] sm:$0xff]   ;;  %v2817_v35 = vld [vmem:[#allocation10 + $0x70] sm:$0xff]  }
 0x207   : > { %2518 = vmatprep.subr.bf16.mxu1 %v3103_v0  ;;  %2538 = vmatprep.subr.bf16.mxu0 %v3103_v0 }
 0x20a   : > { %2519 = vmatpush3.bf16.msra.mxu1 %v2799_v36  ;;  %2539 = vmatpush3.bf16.msra.mxu0 %v2800_v20  ;;  %v2818_v36 = vld [vmem:[#allocation10 + $0x78] sm:$0xff]   ;;  %v2819_v20 = vld [vmem:[#allocation11 + $0x80] sm:$0xff]  }
 0x20b   : > { %2520 = vmatprep.subr.bf16.mxu1 %v3103_v0  ;;  %2540 = vmatprep.subr.bf16.mxu0 %v3103_v0 }
 0x20e   : > { %2521 = vmatpush3.bf16.msra.mxu1 %v2801_v37  ;;  %2541 = vmatpush3.bf16.msra.mxu0 %v2802_v38  ;;  %v2820_v37 = vld [vmem:[#allocation11] sm:$0xff]   ;;  %v2821_v38 = vld [vmem:[#allocation11 + $0x88] sm:$0xff]  }
 0x20f   : > { %2522 = vmatprep.subr.bf16.mxu1 %v3103_v0  ;;  %2542 = vmatprep.subr.bf16.mxu0 %v3103_v0 }
 0x212   : > { %2523 = vmatpush3.bf16.msra.mxu1 %v2803_v39  ;;  %2543 = vmatpush3.bf16.msra.mxu0 %v2804_v40  ;;  %v2822_v39 = vld [vmem:[#allocation11 + $0x8] sm:$0xff]   ;;  %v2823_v40 = vld [vmem:[#allocation11 + $0x90] sm:$0xff]  }
 0x213   : > { %2524 = vmatprep.subr.bf16.mxu1 %v3103_v0  ;;  %2544 = vmatprep.subr.bf16.mxu0 %v3103_v0 }
 0x216   : > { %2525 = vmatpush3.bf16.msra.mxu1 %v2805_v41  ;;  %2545 = vmatpush3.bf16.msra.mxu0 %v2806_v42  ;;  %v2824_v41 = vld [vmem:[#allocation11 + $0x10] sm:$0xff]   ;;  %v2825_v42 = vld [vmem:[#allocation11 + $0x98] sm:$0xff]  }
 0x217   : > { %2526 = vmatprep.subr.bf16.mxu1 %v3103_v0  ;;  %2546 = vmatprep.subr.bf16.mxu0 %v3103_v0 }
 0x21a   : > { %2527 = vmatpush3.bf16.msra.mxu1 %v2807_v43  ;;  %2547 = vmatpush3.bf16.msra.mxu0 %v2808_v44  ;;  %v2826_v43 = vld [vmem:[#allocation11 + $0x18] sm:$0xff]   ;;  %v2827_v44 = vld [vmem:[#allocation11 + $0xa0] sm:$0xff]  }
 0x21b   : > { %2528 = vmatprep.subr.bf16.mxu1 %v3103_v0  ;;  %2548 = vmatprep.subr.bf16.mxu0 %v3103_v0 }
 0x21e   : > { %2529 = vmatpush3.bf16.msra.mxu1 %v2809_v46  ;;  %2549 = vmatpush3.bf16.msra.mxu0 %v2810_v47  ;;  %v2828_v46 = vld [vmem:[#allocation11 + $0x20] sm:$0xff]   ;;  %v2829_v47 = vld [vmem:[#allocation11 + $0xa8] sm:$0xff]  }
 0x21f   : > { %2554 = vmatprep.subr.bf16.mxu1 %v3103_v0  ;;  %2574 = vmatprep.subr.bf16.mxu0 %v3103_v0 }
 0x2b3   : > { %v940_v48 = vpop.f32.mrb[4].mxu1  ;;  %v1045_v49 = vpop.f32.mrb[8].mxu0 }
 0x2b4   : > { %v2452_v50 = vpop.f32.mrb[5].mxu1  ;;  %v2472_v51 = vpop.f32.mrb[9].mxu0  ;;  %v1052_v55 = vrot.slane %v1045_v49, 6  ;;  %v941_v60 = vadd.f32 %v2166_v52, %v940_v48  ;;  %v2830_v48 = vld [vmem:[#allocation11 + $0x28] sm:$0xff]   ;;  %v2831_v49 = vld [vmem:[#allocation11 + $0xb0] sm:$0xff]  }
 0x2b5   : > { %v943_v53 = vpop.f32.mrb[6].mxu1  ;;  %v1048_v54 = vpop.f32.mrb[10].mxu0  ;;  %v2832_v50 = vld [vmem:[#allocation11 + $0x30] sm:$0xff]   ;;  %v2833_v51 = vld [vmem:[#allocation11 + $0xb8] sm:$0xff]  }
 0x2b6   : > { %v944_v56 = vadd.f32 %v2166_v52, %v943_v53  ;;  %v1053_v57 = vrot.slane %v1048_v54, 6  ;;  %v2453_v58 = vpop.f32.mrb[7].mxu1  ;;  %v2473_v59 = vpop.f32.mrb[11].mxu0  ;;  %v2834_v52 = vld [vmem:[#allocation11 + $0x38] sm:$0xff]  }
 0x2b8   : > { %v1054_v61 = vsel %vm705_vm1, %v1052_v55, %v1053_v57  ;;  %v1055_v62 = vsel %vm705_vm1, %v1053_v57, %v1052_v55  ;;  %v2200_v57 = vld [vmem:[%s3749_s1] ss:$0 sm:$0xff]  ;;  %s3017_s1 = sshll.u32 %s3105_s15, 4  ;;  %s3018_s1 = int_to_ptr.vmem [resolvable:$false] %s3017_s1 }
 0x2b9   : > { %v1056_v63 = vsel %vm708_vm2, %v1055_v62, 0.0  ;;  %v1059_v1 = vadd.f32 %v1054_v61, %v944_v56  ;;  %s3019_s21 = scalar_lea.vmem %s3018_s1, 512  ;;  %p3020_p13 = scmp.lt.s32.totalorder %s3669_s26, %s3018_s1 }
 0x2ba   : > { %v1058_v2 = vadd.f32 %v1056_v63, %v941_v60  ;;  %p3021_p0 = scmp.lt.s32.totalorder %s3019_s21, %s3013_s28 }
 0x2bc   : > { %p3022_p2 = por %p3021_p0, %p3020_p13 }
 0x2be   : > { %p3023_p8 = pnand %p3022_p2, %p3016_p1 }
 0x2d3   : > { %v1159_v3 = vpop.f32.mrb[8].mxu1  ;;  %v1281_v4 = vpop.f32.mrb[12].mxu0 }
 0x2d4   : > { %v2492_v5 = vpop.f32.mrb[9].mxu1  ;;  %v2512_v6 = vpop.f32.mrb[13].mxu0  ;;  %v1166_v9 = vrot.slane %v1159_v3, 7  ;;  %v1282_v23 = vadd.f32 %v2191_v12, %v1281_v4 }
 0x2d5   : > { %v1162_v7 = vpop.f32.mrb[10].mxu1  ;;  %v1284_v8 = vpop.f32.mrb[14].mxu0 }
 0x2d6   : > { %v1167_v10 = vrot.slane %v1162_v7, 7  ;;  %v2493_v11 = vpop.f32.mrb[11].mxu1  ;;  %v2513_v13 = vpop.f32.mrb[15].mxu0  ;;  %v1285_v18 = vadd.f32 %v2191_v12, %v1284_v8 }
 0x2d8   : > { %v1168_v14 = vsel %vm822_vm3, %v1166_v9, %v1167_v10  ;;  %v1169_v15 = vsel %vm822_vm3, %v1167_v10, %v1166_v9 }
 0x2d9   : > { %v1170_v16 = vsel %vm825_vm4, %v1169_v15, 0.0  ;;  %v1173_v17 = vadd.f32 %v1168_v14, %v1059_v1 }
 0x2da   : > { %v1172_v19 = vadd.f32 %v1170_v16, %v1058_v2 }
 0x2db   : > { %v1175_v21 = vmax.f32 %v1173_v17, 0.0 }
 0x2dc   : > { %v1174_v22 = vmax.f32 %v1172_v19, 0.0 }
 0x2dd   : > { %v3577_v24 = vadd.f32 %v1285_v18, %v1175_v21 }
 0x2de   : > { %v3579_v25 = vadd.f32 %v1282_v23, %v1174_v22  ;;  %v2835_v22 = vld [vmem:[#allocation11 + $0x40] sm:$0xff]  }
 0x2df   : > { %v1291_v26 = vmax.f32 %v3577_v24, 0.0 }
 0x2e0   : > { %v1290_v27 = vmax.f32 %v3579_v25, 0.0 }
 0x2e2   : > { %v1292_v29 = vpack.c.bf16 %v1291_v26, %v1290_v27 }
 0x2e4   : > { %2531 = vmatmul.mubr.bf16.vlgmr.msra.gmra.mrb[12].mxu1 %v1292_v29  ;;  %2551 = vmatmul.mubr.bf16.vlgmr.msra.gmra.mrb[16].mxu0 %v1292_v29 }
 0x2e5   : > { %2555 = vmatpush3.bf16.msra.mxu1 %v2811_v28  ;;  %2570 = vmatprep.mubr.msk.bf16.mxu1 %vm3104_vm0, %v3103_v0  ;;  %v2836_v28 = vld [vmem:[#allocation11 + $0x48] sm:$0xff]  }
 0x2e6   : > { %2556 = vmatprep.subr.bf16.mxu1 %v3103_v0  ;;  %2590 = vmatprep.mubr.msk.bf16.mxu0 %vm3104_vm0, %v3103_v0 }
 0x2e7   : > { %2575 = vmatpush3.bf16.msra.mxu0 %v2819_v20 }
 0x2e8   : > { %2576 = vmatprep.subr.bf16.mxu0 %v3103_v0 }
 0x2e9   : > { %2557 = vmatpush3.bf16.msra.mxu1 %v2812_v30  ;;  %v2838_v30 = vld [vmem:[#allocation11 + $0x58] sm:$0xff]  }
 0x2ea   : > { %2558 = vmatprep.subr.bf16.mxu1 %v3103_v0 }
 0x2eb   : > { %2577 = vmatpush3.bf16.msra.mxu0 %v2821_v38  ;;  %v2225_v38 = vld [vmem:[%s3750_s22] ss:$0 sm:$0xff] }
 0x2ec   : > { %2578 = vmatprep.subr.bf16.mxu0 %v3103_v0 }
 0x2ed   : > { %2559 = vmatpush3.bf16.msra.mxu1 %v2813_v31  ;;  %v2839_v31 = vld [vmem:[#allocation11 + $0x60] sm:$0xff]  }
 0x2ee   : > { %2560 = vmatprep.subr.bf16.mxu1 %v3103_v0 }
 0x2ef   : > { %2579 = vmatpush3.bf16.msra.mxu0 %v2823_v40 }
 0x2f0   : > { %2580 = vmatprep.subr.bf16.mxu0 %v3103_v0 }
 0x2f1   : > { %2561 = vmatpush3.bf16.msra.mxu1 %v2814_v32  ;;  %v2840_v32 = vld [vmem:[#allocation11 + $0x68] sm:$0xff]  }
 0x2f2   : > { %2562 = vmatprep.subr.bf16.mxu1 %v3103_v0 }
 0x2f3   : > { %2581 = vmatpush3.bf16.msra.mxu0 %v2825_v42 }
 0x2f4   : > { %2582 = vmatprep.subr.bf16.mxu0 %v3103_v0 }
 0x2f5   : > { %2563 = vmatpush3.bf16.msra.mxu1 %v2815_v33  ;;  %v2841_v33 = vld [vmem:[#allocation11 + $0x70] sm:$0xff]  }
 0x2f6   : > { %2564 = vmatprep.subr.bf16.mxu1 %v3103_v0 }
 0x2f7   : > { %2583 = vmatpush3.bf16.msra.mxu0 %v2827_v44 }
 0x2f8   : > { %2584 = vmatprep.subr.bf16.mxu0 %v3103_v0 }
 0x2f9   : > { %2565 = vmatpush3.bf16.msra.mxu1 %v2816_v34  ;;  %v2842_v34 = vld [vmem:[#allocation11 + $0x78] sm:$0xff]  }
 0x2fa   : > { %2566 = vmatprep.subr.bf16.mxu1 %v3103_v0 }
 0x2fb   : > { %2585 = vmatpush3.bf16.msra.mxu0 %v2829_v47 }
 0x2fc   : > { %2586 = vmatprep.subr.bf16.mxu0 %v3103_v0 }
 0x2fd   : > { %2567 = vmatpush3.bf16.msra.mxu1 %v2817_v35 }
 0x2fe   : > { %2568 = vmatprep.subr.bf16.mxu1 %v3103_v0 }
 0x2ff   : > { %2587 = vmatpush3.bf16.msra.mxu0 %v2831_v49 }
 0x300   : > { %2588 = vmatprep.subr.bf16.mxu0 %v3103_v0 }
 0x301   : > { %2569 = vmatpush3.bf16.msra.mxu1 %v2818_v36 }
 0x302   : > { %2594 = vmatprep.subr.bf16.mxu1 %v3103_v0 }
 0x303   : > { %2589 = vmatpush3.bf16.msra.mxu0 %v2833_v51 }
 0x304   : > { %2571 = vmatmul.mubr.bf16.vlgmr.msra.gmra.mrb[16].mxu1 %v1292_v29  ;;  %2614 = vmatprep.subr.bf16.mxu0 %v3103_v0  ;;  %v2837_v29 = vld [vmem:[#allocation11 + $0x50] sm:$0xff]  }
 0x305   : > { %2610 = vmatprep.mubr.msk.bf16.mxu1 %vm3104_vm0, %v3103_v0  ;;  %2595 = vmatpush3.bf16.msra.mxu1 %v2820_v37 }
 0x306   : > { %2596 = vmatprep.subr.bf16.mxu1 %v3103_v0 }
 0x309   : > { %2597 = vmatpush3.bf16.msra.mxu1 %v2822_v39 }
 0x30a   : > { %2598 = vmatprep.subr.bf16.mxu1 %v3103_v0 }
 0x30d   : > { %2599 = vmatpush3.bf16.msra.mxu1 %v2824_v41 }
 0x30e   : > { %2600 = vmatprep.subr.bf16.mxu1 %v3103_v0 }
 0x311   : > { %2601 = vmatpush3.bf16.msra.mxu1 %v2826_v43 }
 0x312   : > { %2602 = vmatprep.subr.bf16.mxu1 %v3103_v0 }
 0x315   : > { %2603 = vmatpush3.bf16.msra.mxu1 %v2828_v46 }
 0x316   : > { %2604 = vmatprep.subr.bf16.mxu1 %v3103_v0 }
 0x319   : > { %2605 = vmatpush3.bf16.msra.mxu1 %v2830_v48 }
 0x31a   : > { %2606 = vmatprep.subr.bf16.mxu1 %v3103_v0 }
 0x31d   : > { %2607 = vmatpush3.bf16.msra.mxu1 %v2832_v50 }
 0x31e   : > { %2608 = vmatprep.subr.bf16.mxu1 %v3103_v0 }
 0x321   : > { %2609 = vmatpush3.bf16.msra.mxu1 %v2834_v52 }
 0x3b7   : > { %v1399_v53 = vpop.f32.mrb[12].mxu1  ;;  %v1504_v54 = vpop.f32.mrb[16].mxu0 }
 0x3b8   : > { %v2532_v55 = vpop.f32.mrb[13].mxu1  ;;  %v2552_v56 = vpop.f32.mrb[17].mxu0  ;;  %v1511_v60 = vrot.slane %v1504_v54, 4  ;;  %v1400_v2 = vadd.f32 %v2200_v57, %v1399_v53 }
 0x3b9   : > { %v1402_v58 = vpop.f32.mrb[14].mxu1  ;;  %v1507_v59 = vpop.f32.mrb[18].mxu0 }
 0x3ba   : > { %v1403_v61 = vadd.f32 %v2200_v57, %v1402_v58  ;;  %v1512_v62 = vrot.slane %v1507_v59, 4  ;;  %v2533_v63 = vpop.f32.mrb[15].mxu1  ;;  %v2553_v1 = vpop.f32.mrb[19].mxu0 }
 0x3bc   : > { %v1514_v3 = vsel %vm1513_vm5, %v1511_v60, %v1512_v62  ;;  %v1515_v4 = vsel %vm1513_vm5, %v1512_v62, %v1511_v60 }
 0x3bd   : > { %v1518_v5 = vsel %vm1516_vm6, %v1515_v4, 0.0  ;;  %v1521_v6 = vadd.f32 %v1514_v3, %v1403_v61 }
 0x3be   : > { %v1520_v7 = vadd.f32 %v1518_v5, %v1400_v2 }
 0x3d7   : > { %v1621_v8 = vpop.f32.mrb[16].mxu1 }
 0x3d8   : > { %v2572_v9 = vpop.f32.mrb[17].mxu1  ;;  %v1628_v11 = vrot.slane %v1621_v8, 6 }
 0x3d9   : > { %v1624_v10 = vpop.f32.mrb[18].mxu1 }
 0x3da   : > { %v1629_v12 = vrot.slane %v1624_v10, 6  ;;  %v2573_v13 = vpop.f32.mrb[19].mxu1 }
 0x3dc   : > { %v1630_v14 = vsel %vm705_vm1, %v1628_v11, %v1629_v12  ;;  %v1631_v15 = vsel %vm705_vm1, %v1629_v12, %v1628_v11 }
 0x3dd   : > { %v1632_v16 = vsel %vm708_vm2, %v1631_v15, 0.0  ;;  %v1635_v17 = vadd.f32 %v1630_v14, %v1521_v6 }
 0x3de   : > { %v1634_v18 = vadd.f32 %v1632_v16, %v1520_v7 }
 0x3df   : > { %v1637_v19 = vmax.f32 %v1635_v17, 0.0 }
 0x3e0   : > { %v1636_v21 = vmax.f32 %v1634_v18, 0.0 }
 0x3e2   : > { %v1638_v23 = vpack.c.bf16 %v1637_v19, %v1636_v21 }
 0x3e4   : > { %2591 = vmatmul.mubr.bf16.vlgmr.msra.gmra.mrb[20].mxu0 %v1638_v23  ;;  %2611 = vmatmul.mubr.bf16.vlgmr.msra.gmra.mrb[20].mxu1 %v1638_v23 }
 0x3e5   : > { %2615 = vmatpush3.bf16.msra.mxu0 %v2835_v22  ;;  %2630 = vmatprep.mubr.msk.bf16.mxu0 %vm3104_vm0, %v3103_v0 }
 0x3e6   : > { %2616 = vmatprep.subr.bf16.mxu0 %v3103_v0 }
 0x3e9   : > { %2617 = vmatpush3.bf16.msra.mxu0 %v2836_v28 }
 0x3ea   : > { %2618 = vmatprep.subr.bf16.mxu0 %v3103_v0 }
 0x3ed   : > { %2619 = vmatpush3.bf16.msra.mxu0 %v2837_v29 }
 0x3ee   : > { %2620 = vmatprep.subr.bf16.mxu0 %v3103_v0 }
 0x3f1   : > { %2621 = vmatpush3.bf16.msra.mxu0 %v2838_v30 }
 0x3f2   : > { %2622 = vmatprep.subr.bf16.mxu0 %v3103_v0 }
 0x3f5   : > { %2623 = vmatpush3.bf16.msra.mxu0 %v2839_v31 }
 0x3f6   : > { %2624 = vmatprep.subr.bf16.mxu0 %v3103_v0 }
 0x3f9   : > { %2625 = vmatpush3.bf16.msra.mxu0 %v2840_v32 }
 0x3fa   : > { %2626 = vmatprep.subr.bf16.mxu0 %v3103_v0 }
 0x3fd   : > { %2627 = vmatpush3.bf16.msra.mxu0 %v2841_v33 }
 0x3fe   : > { %2628 = vmatprep.subr.bf16.mxu0 %v3103_v0 }
 0x401   : > { %2629 = vmatpush3.bf16.msra.mxu0 %v2842_v34 }
 0x404   : > { %2631 = vmatmul.mubr.bf16.vlgmr.msra.gmra.mrb[24].mxu0 %v1638_v23 }
 0x4b7   : > { %v1745_v35 = vpop.f32.mrb[20].mxu0  ;;  %v1850_v36 = vpop.f32.mrb[20].mxu1 }
 0x4b8   : > { %v2592_v20 = vpop.f32.mrb[21].mxu0  ;;  %v2612_v37 = vpop.f32.mrb[21].mxu1  ;;  %v1857_v41 = vrot.slane %v1850_v36, 4  ;;  %v1746_v47 = vadd.f32 %v2225_v38, %v1745_v35 }
 0x4b9   : > { %v1748_v39 = vpop.f32.mrb[22].mxu0  ;;  %v1853_v40 = vpop.f32.mrb[22].mxu1 }
 0x4ba   : > { %v1749_v42 = vadd.f32 %v2225_v38, %v1748_v39  ;;  %v1858_v43 = vrot.slane %v1853_v40, 4  ;;  %v2593_v44 = vpop.f32.mrb[23].mxu0  ;;  %v2613_v46 = vpop.f32.mrb[23].mxu1 }
 0x4bc   : > { %v1859_v0 = vsel %vm1513_vm5, %v1857_v41, %v1858_v43  ;;  %v1860_v48 = vsel %vm1513_vm5, %v1858_v43, %v1857_v41 }
 0x4bd   : > { %v1861_v49 = vsel %vm1516_vm6, %v1860_v48, 0.0  ;;  %v1864_v50 = vadd.f32 %v1859_v0, %v1749_v42 }
 0x4be   : > { %v1863_v51 = vadd.f32 %v1861_v49, %v1746_v47 }
 0x4d7   : > { %v1964_v52 = vpop.f32.mrb[24].mxu0 }
 0x4d8   : > { %v2632_v53 = vpop.f32.mrb[25].mxu0  ;;  %v1971_v55 = vrot.slane %v1964_v52, 6 }
 0x4d9   : > { %v1967_v54 = vpop.f32.mrb[26].mxu0 }
 0x4da   : > { %v1972_v56 = vrot.slane %v1967_v54, 6  ;;  %v2633_v57 = vpop.f32.mrb[27].mxu0 }
 0x4dc   : > { %v1973_v58 = vsel %vm705_vm1, %v1971_v55, %v1972_v56  ;;  %v1974_v59 = vsel %vm705_vm1, %v1972_v56, %v1971_v55 }
 0x4dd   : > { %v1975_v60 = vsel %vm708_vm2, %v1974_v59, 0.0  ;;  %v1978_v61 = vadd.f32 %v1973_v58, %v1864_v50 }
 0x4de   : > { %v1977_v62 = vadd.f32 %v1975_v60, %v1863_v51 }
 0x4df   : > { %v1980_v63 = vmax.f32 %v1978_v61, 0.0 }
 0x4e0   : > { %v1979_v1 = vmax.f32 %v1977_v62, 0.0 }
 0x4e1   : > { %v1982_v2 = vadd.f32 %v1980_v63, %v1291_v26 }
 0x4e2   : > { %v1981_v3 = vadd.f32 %v1979_v1, %v1290_v27 }
 0x4e3   : > { %v1984_v4 = vmax.f32 %v1982_v2, 0.0 }
 0x4e4   : > { %v1983_v45 = vmax.f32 %v1981_v3, 0.0 }
 0x4e5   : > { %1986 = vst [vmem:[%s477_s13 + $0x8] sm:$0xff] %v1984_v4 }
 0x4e6   : > { %1985 = vst [vmem:[%s477_s13] sm:$0xff] %v1983_v45 }
 0x4e7   : > { %3026 = shalt.err (!%p3023_p8)
}
 0x4e8   : > { %s3027_s12 = scalar_lea.hbm %s3667_s8, 256  ;;  %s3031_s13 = scalar_lea.hbm %s3751_s27, 512 }
 0x4e9   : > { %p3028_p6 = scmp.ne.s32.totalorder %s3667_s8, %s3027_s12  ;;  %p3032_p3 = scmp.lt.u32.totalorder %s3667_s8, %s3751_s27 }
 0x4ea   : > { %p3033_p5 = scmp.lt.u32.totalorder %s3031_s13, %s3027_s12  ;;  %p3035_p7 = scmp.lt.u32.totalorder %s3027_s12, %s3667_s8 }
 0x4eb   : > { %p3029_p10 = pnand %p3028_p6, %p3752_p4 }
 0x4ec   : > { %p3034_p9 = por %p3033_p5, %p3032_p3 }
 0x4ed   : > { %p3030_p11 = pneg %p3029_p10 }
 0x4ee   : > { %p3036_p12 = por %p3035_p7, %p3034_p9 }
 0x4f0   : > { %p3037_p1 = pnand %p3036_p12, %p3030_p11 }
 0x4f2   : > { %3040 = shalt.err (!%p3037_p1)
}
 0x4f3   : > { %s3106_s28 = smov 128   ;;  %s3107_s15 = smov 8  }
 0x4f4   : > { %2656 = dma.vmem_to_hbm [thread:$0]  (%p3752_p4), %s3669_s26, 256, %s3667_s8, %s1988_s23, %s3106_s28, %s3106_s28, %s3107_s15  }
 0x4f5 PF: > { %s2016_s1 = sand.u32 1, %s3079_s17   ;;  %p3753_p13 = scmp.ne.s32.totalorder %s3740_s14, 0 }
 0x4f6   : > { %p3754_p0 = scmp.ge.s32.totalorder %s3091_s20, 2  ;;  %s2017_s21 = scalar_lea.sflag [#allocation4], %s2016_s1 }
 0x4f8   : > { %p2679_p2 = pnand %p3754_p0, %p3753_p13 }
 0x4fa   : > { %3074 = dma.done.wait (!%p2679_p2), %s2017_s21, 256  }
 0x4fb   : > { %3076 = vsyncadd (!%p2679_p2), %s2017_s21, 4294967040  ;;  %p27_p8 = scmp.ge.s32.totalorder %s3341_s16, 4   ;;  %s3755_s17 = smov %s3083_s18 }
 0x4fc   : > { %s3756_s18 = smov %s3087_s19  ;;  %s3757_s19 = smov %s3353_s10 }
 0x4fd   : > { %s3758_s20 = smov %s3341_s16  ;;  %29 = sbr.rel (!%p27_p8) target bundleno = 13 (0xd), region = 137 }
 0x504   :  { %2022 = vsyncpa [#allocation3], 1 }
 0x505   :  { %2024 = vsyncpa [#allocation3 + $0x1], 1 }
 0x506   :  { %2025 = vsyncpa [#allocation6], 1 }
 0x507   :  { %2026 = vsyncpa [#allocation9], 1 }
 0x508   :  { %2027 = vsyncpa [#allocation12], 1 }
 0x509   :  { %2028 = vsyncpa [#allocation4], 1 }
 0x50a   :  { %2030 = vsyncpa [#allocation4 + $0x1], 1 }

</bundles_post_ra>
